<compile_context>
chip_gen: v5e
topology: v5e:2x2
jax: 0.10.0
libtpu: 0.0.40
codegen_flags: <defaults>
</compile_context>

<pallas_src>
import functools

import jax
import jax.numpy as jnp
from jax.experimental import pallas as pl
from jax.experimental.pallas import tpu as pltpu

DECAY = 0.3
THRESH = 0.5


def _round_up(x, m):
    return (x + m - 1) // m * m


# ------------------------------ Pallas kernel ------------------------------ #

def hybrid_kernel(xy_ref, w_ref, b_ref, mem_ref, spike_ref, smask_ref,
                  rmask_ref,
                  mem_out_ref, spike_out_ref, y_out_ref, ps_out_ref,
                  py_out_ref,
                  *, k, pad, Wp, pool_k, Cs, Cr):
    """One grid step = a block of whole images laid out along the lane axis."""
    xy = xy_ref[...].astype(jnp.float32)            # (Cin+Cr, B)
    B = xy.shape[-1]

    # --- all three convs as k*k shifted-tap matmuls on the MXU ---
    acc = jnp.zeros((Cs + 2 * Cr, B), jnp.float32)
    for kh in range(k):
        for kw in range(k):
            d = (kh - pad) * Wp + (kw - pad)        # centre-aligned tap offset
            tap = xy if d == 0 else pltpu.roll(xy, shift=(-d) % B, axis=1)
            acc = acc + jnp.dot(w_ref[kh * k + kw], tap,
                                preferred_element_type=jnp.float32)
    acc = acc + b_ref[...]                          # (Cs+2Cr, 1) lane-broadcast

    s_conv = acc[0:Cs]                              # scnn_fc(x)
    r_fc = acc[Cs:Cs + Cr]                          # rcnn_fc(x)
    r_fv = jnp.maximum(acc[Cs + Cr:Cs + 2 * Cr], 0.0)   # relu(rcnn_fv(y))

    smask = smask_ref[...].astype(jnp.float32)
    rmask = rmask_ref[...].astype(jnp.float32)

    # --- SCNN LIF: mem = mem*decay*(1-spike) + conv ; spike = (mem-thr) > 0 ---
    mem = mem_ref[...] * DECAY * (1.0 - spike_ref[...]) + s_conv
    spike = (mem - THRESH > 0.0).astype(jnp.float32)      # ActFun.forward
    mem_m = mem * smask                # masks are zero at spatial padding, so
    spike_m = spike * smask            # they also kill conv halo garbage.
    mem_out_ref[...] = mem_m
    spike_out_ref[...] = spike_m

    # --- RCNN: y = tanh(fc(x) + relu(fv(y))) * mask ---
    y = jnp.tanh(r_fc + r_fv) * rmask
    y_out_ref[...] = y

    # --- fused pool_k x pool_k average pool (top-left aligned taps) ---
    def pooled(v):
        out = v
        for dr in range(pool_k):
            for dc in range(pool_k):
                if dr == 0 and dc == 0:
                    continue
                d = dr * Wp + dc
                out = out + pltpu.roll(v, shift=(-d) % B, axis=1)
        return out * (1.0 / (pool_k * pool_k))

    ps_out_ref[...] = pooled(spike_m)
    py_out_ref[...] = pooled(y)


# ------------------------------ layout glue -------------------------------- #

def _to_flat(x, pad, S, dtype):
    """(N, C, H, W) -> (C, N*S): zero-pad spatially, flatten, pad to S/image."""
    N, C, H, W = x.shape
    Hp, Wp = H + 2 * pad, W + 2 * pad
    xp = jnp.pad(x, ((0, 0), (0, 0), (pad, pad), (pad, pad)))
    xf = jnp.transpose(xp, (1, 0, 2, 3)).reshape(C, N, Hp * Wp)
    xf = jnp.pad(xf, ((0, 0), (0, 0), (0, S - Hp * Wp)))
    return xf.reshape(C, N * S).astype(dtype)


def _from_flat(xf, N, H, W, pad, S, step=1):
    """(C, N*S) -> (N, C, H//step, W//step) pulling (optionally strided) pixels."""
    C = xf.shape[0]
    Hp, Wp = H + 2 * pad, W + 2 * pad
    x = xf.reshape(C, N, S)[:, :, :Hp * Wp].reshape(C, N, Hp, Wp)
    x = x[:, :, pad:pad + H:step, pad:pad + W:step]
    return jnp.transpose(x, (1, 0, 2, 3))


# -------------------------------- wrapper ----------------------------------- #

@functools.partial(jax.jit, static_argnames=("k", "stride", "fc_pad", "fv_pad",
                                             "pool_k", "pool_s"))
def hybrid_layer2_forward(inputs, scnn_mem, scnn_spike, rcnn_y,
                          w_sfc, b_sfc, w_rfc, b_rfc, w_rfv, b_rfv,
                          scnn_mask, rcnn_mask,
                          *, k, stride, fc_pad, fv_pad, pool_k, pool_s):
    N, Cin, H, W = inputs.shape
    Cs = w_sfc.shape[0]
    Cr = w_rfc.shape[0]
    assert stride == 1, "TODO(synk): conv_stride != 1 not implemented"
    assert fc_pad == fv_pad and 2 * fc_pad == k - 1, \
        "TODO(synk): only same-size convs (fc_pad == fv_pad, 2*pad == k-1)"
    assert pool_k == pool_s and H % pool_k == 0 and W % pool_k == 0
    pad = fc_pad
    Hp, Wp = H + 2 * pad, W + 2 * pad
    S = _round_up(Hp * Wp, 128)                   # per-image lane stride

    # ---- glue: model-boundary NCHW -> planar-flat layout (in a time loop the
    #      flat (C, N*S) tensors would be carried directly as state) ----
    x_flat = _to_flat(inputs, pad, S, jnp.bfloat16)            # (Cin, N*S)
    y_flat = _to_flat(rcnn_y, pad, S, jnp.bfloat16)            # (Cr,  N*S)
    xy_flat = jnp.concatenate([x_flat, y_flat], axis=0)        # (Cin+Cr, N*S)
    mem_flat = _to_flat(scnn_mem, pad, S, jnp.float32)
    spike_flat = _to_flat(scnn_spike, pad, S, jnp.float32)
    smask_flat = _to_flat(scnn_mask, pad, S, jnp.bfloat16)
    rmask_flat = _to_flat(rcnn_mask, pad, S, jnp.bfloat16)

    # Combined (scnn_fc | rcnn_fc | rcnn_fv) tap weights, block-diagonal over
    # the stacked {x, y} input planes: shape (k*k, Cs+2Cr, Cin+Cr).
    wsf = jnp.transpose(w_sfc, (2, 3, 0, 1)).reshape(k * k, Cs, Cin)
    wrf = jnp.transpose(w_rfc, (2, 3, 0, 1)).reshape(k * k, Cr, Cin)
    wrv = jnp.transpose(w_rfv, (2, 3, 0, 1)).reshape(k * k, Cr, Cr)
    zf = jnp.zeros((k * k, Cs, Cr), jnp.float32)
    zr = jnp.zeros((k * k, Cr, Cr), jnp.float32)
    zv = jnp.zeros((k * k, Cr, Cin), jnp.float32)
    w_all = jnp.concatenate([
        jnp.concatenate([wsf, zf], axis=2),
        jnp.concatenate([wrf, zr], axis=2),
        jnp.concatenate([zv, wrv], axis=2)], axis=1).astype(jnp.float32)
    b_all = jnp.concatenate([b_sfc, b_rfc, b_rfv]).reshape(Cs + 2 * Cr, 1)
    b_all = b_all.astype(jnp.float32)

    # ---- grid: tile whole images along the lane axis.  Block sized to stay a
    #      few MiB with double buffering (fits v5e's 16 MiB scoped default and
    #      v7x's smaller VMEM); weights/bias replicated per tile. ----
    target_lanes = 16 * 1024
    Nb = max(1, min(N, target_lanes // S))
    while N % Nb:
        Nb -= 1
    B_lane = Nb * S
    grid = (N // Nb,)
    act = lambda c: pl.BlockSpec((c, B_lane), lambda i: (0, i))

    kern = functools.partial(hybrid_kernel, k=k, pad=pad, Wp=Wp,
                             pool_k=pool_k, Cs=Cs, Cr=Cr)
    NS = N * S
    mem_o, spike_o, y_o, ps_o, py_o = pl.pallas_call(
        kern,
        grid=grid,
        in_specs=[
            act(Cin + Cr),                                       # xy (bf16)
            pl.BlockSpec((k * k, Cs + 2 * Cr, Cin + Cr),
                         lambda i: (0, 0, 0)),                   # tap weights
            pl.BlockSpec((Cs + 2 * Cr, 1), lambda i: (0, 0)),    # bias
            act(Cs),                                             # mem   (f32)
            act(Cs),                                             # spike (f32)
            act(Cs),                                             # scnn_mask
            act(Cr),                                             # rcnn_mask
        ],
        out_specs=(act(Cs), act(Cs), act(Cr), act(Cs), act(Cr)),
        out_shape=(jax.ShapeDtypeStruct((Cs, NS), jnp.float32),   # mem
                   jax.ShapeDtypeStruct((Cs, NS), jnp.float32),   # spike
                   jax.ShapeDtypeStruct((Cr, NS), jnp.float32),   # y
                   jax.ShapeDtypeStruct((Cs, NS), jnp.float32),   # pooled spike
                   jax.ShapeDtypeStruct((Cr, NS), jnp.float32)),  # pooled y
        input_output_aliases={3: 0, 4: 1},   # mem / spike state updated in place
        compiler_params=pltpu.CompilerParams(
            dimension_semantics=("parallel",)),
    )(xy_flat, w_all, b_all, mem_flat, spike_flat, smask_flat, rmask_flat)

    # ---- glue: planar flat -> model-boundary NCHW ----
    scnn_mem_new = _from_flat(mem_o, N, H, W, pad, S)
    scnn_spike_new = _from_flat(spike_o, N, H, W, pad, S)
    rcnn_y_new = _from_flat(y_o, N, H, W, pad, S)
    pooled_scnn_spike = _from_flat(ps_o, N, H, W, pad, S, step=pool_k)
    pooled_rcnn_y = _from_flat(py_o, N, H, W, pad, S, step=pool_k)
    return (scnn_mem_new, scnn_spike_new, rcnn_y_new,
            pooled_scnn_spike, pooled_rcnn_y)


# ----------------------------- pure-JAX reference --------------------------- #

def reference_forward(inputs, mem, spike, y,
                      w_sfc, b_sfc, w_rfc, b_rfc, w_rfv, b_rfv,
                      smask, rmask, *, pad, pool_k):
    def q(v):  # mirror the kernel's bf16 HBM storage of x / y
        return v.astype(jnp.bfloat16).astype(jnp.float32)

    def conv(x, w, b):
        out = jax.lax.conv_general_dilated(
            q(x), w, window_strides=(1, 1),
            padding=[(pad, pad), (pad, pad)],
            dimension_numbers=("NCHW", "OIHW", "NCHW"),
            precision=jax.lax.Precision.HIGHEST,
            preferred_element_type=jnp.float32)
        return out + b.reshape(1, -1, 1, 1)

    mem_n = mem * DECAY * (1.0 - spike) + conv(inputs, w_sfc, b_sfc)
    spike_n = (mem_n - THRESH > 0.0).astype(jnp.float32)
    mem_n = mem_n * smask
    spike_n = spike_n * smask
    y_n = jnp.tanh(conv(inputs, w_rfc, b_rfc)
                   + jnp.maximum(conv(y, w_rfv, b_rfv), 0.0)) * rmask

    def pool(v):
        s = jax.lax.reduce_window(v, 0.0, jax.lax.add,
                                  (1, 1, pool_k, pool_k),
                                  (1, 1, pool_k, pool_k), "VALID")
        return s / float(pool_k * pool_k)

    return mem_n, spike_n, y_n, pool(spike_n), pool(y_n)


# ---------------------------------- main ------------------------------------ #

if __name__ == "__main__":
    N, Cin, H, W = 2, 2, 16, 16
    scnn_ch, rcnn_ch = 4, 4
    k, stride = 3, 1
    fc_pad, fv_pad = 1, 1
    pool_k, pool_s = 2, 2

    key = jax.random.PRNGKey(0)
    ks = jax.random.split(key, 12)

    inputs = jax.random.normal(ks[0], (N, Cin, H, W), jnp.float32)
    scnn_mem = jax.random.normal(ks[1], (N, scnn_ch, H, W), jnp.float32) * 0.1
    scnn_spike = (jax.random.uniform(ks[2], (N, scnn_ch, H, W)) > 0.5).astype(jnp.float32)
    rcnn_y = jax.random.normal(ks[3], (N, rcnn_ch, H, W), jnp.float32) * 0.1

    fan_sfc = Cin * k * k
    fan_rfv = rcnn_ch * k * k
    w_sfc = jax.random.uniform(ks[4], (scnn_ch, Cin, k, k), jnp.float32,
                               -1.0, 1.0) / jnp.sqrt(fan_sfc * 1.0)
    b_sfc = jax.random.uniform(ks[5], (scnn_ch,), jnp.float32, -1.0, 1.0) / jnp.sqrt(fan_sfc * 1.0)
    w_rfc = jax.random.uniform(ks[6], (rcnn_ch, Cin, k, k), jnp.float32,
                               -1.0, 1.0) / jnp.sqrt(fan_sfc * 1.0)
    b_rfc = jax.random.uniform(ks[7], (rcnn_ch,), jnp.float32, -1.0, 1.0) / jnp.sqrt(fan_sfc * 1.0)
    w_rfv = jax.random.uniform(ks[8], (rcnn_ch, rcnn_ch, k, k), jnp.float32,
                               -1.0, 1.0) / jnp.sqrt(fan_rfv * 1.0)
    b_rfv = jax.random.uniform(ks[9], (rcnn_ch,), jnp.float32, -1.0, 1.0) / jnp.sqrt(fan_rfv * 1.0)

    scnn_mask = (jax.random.uniform(ks[10], (N, scnn_ch, H, W)) > 0.2).astype(jnp.float32)
    rcnn_mask = (jax.random.uniform(ks[11], (N, rcnn_ch, H, W)) > 0.2).astype(jnp.float32)

    outs = hybrid_layer2_forward(
        inputs, scnn_mem, scnn_spike, rcnn_y,
        w_sfc, b_sfc, w_rfc, b_rfc, w_rfv, b_rfv,
        scnn_mask, rcnn_mask,
        k=k, stride=stride, fc_pad=fc_pad, fv_pad=fv_pad,
        pool_k=pool_k, pool_s=pool_s)
    outs = jax.block_until_ready(outs)

    refs = reference_forward(
        inputs, scnn_mem, scnn_spike, rcnn_y,
        w_sfc, b_sfc, w_rfc, b_rfc, w_rfv, b_rfv,
        scnn_mask, rcnn_mask, pad=fc_pad, pool_k=pool_k)
    refs = jax.block_until_ready(refs)

    names = ("scnn_mem", "scnn_spike", "rcnn_y",
             "pooled_scnn_spike", "pooled_rcnn_y")
    for name, got, want in zip(names, outs, refs):
        assert got.shape == want.shape, (name, got.shape, want.shape)
        if "spike" in name:
            # Hard threshold: tolerate rare borderline flips from accumulation
            # order / precision differences.
            frac = float(jnp.mean((jnp.abs(got - want) > 0.26).astype(jnp.float32)))
            assert frac <= 0.02, (name, frac)
        else:
            err = float(jnp.max(jnp.abs(got - want)))
            assert err < 5e-2, (name, err)

    assert outs[0].shape == (N, scnn_ch, H, W)
    assert outs[3].shape == (N, scnn_ch, H // pool_k, W // pool_k)
    assert outs[4].shape == (N, rcnn_ch, H // pool_k, W // pool_k)
    print("KERNEL_OK")
</pallas_src>

<mosaic_0001>
module attributes {stable_mosaic.version = 11 : i64} {
  func.func @hybrid_kernel(%arg0: i32, %arg1: memref<6x768xbf16, #tpu.memory_space<vmem>>, %arg2: memref<9x12x6xf32, #tpu.memory_space<vmem>>, %arg3: memref<12x1xf32, #tpu.memory_space<vmem>>, %arg4: memref<4x768xf32, #tpu.memory_space<vmem>>, %arg5: memref<4x768xf32, #tpu.memory_space<vmem>>, %arg6: memref<4x768xbf16, #tpu.memory_space<vmem>>, %arg7: memref<4x768xbf16, #tpu.memory_space<vmem>>, %arg8: memref<4x768xf32, #tpu.memory_space<vmem>>, %arg9: memref<4x768xf32, #tpu.memory_space<vmem>>, %arg10: memref<4x768xf32, #tpu.memory_space<vmem>>, %arg11: memref<4x768xf32, #tpu.memory_space<vmem>>, %arg12: memref<4x768xf32, #tpu.memory_space<vmem>>) attributes {dimension_semantics = [#tpu.dimension_semantics<parallel>], iteration_bounds = array<i64: 1>, scalar_prefetch = 0 : i64, scratch_operands = 0 : i64, tpu.core_type = #tpu.core_type<tc>, window_params = [{transform_indices = @transform_0, window_bounds = array<i64: 6, 768>}, {pipeline_mode = #tpu.pipeline_mode<synchronous>, transform_indices = @transform_1, window_bounds = array<i64: 9, 12, 6>}, {pipeline_mode = #tpu.pipeline_mode<synchronous>, transform_indices = @transform_2, window_bounds = array<i64: 12, 1>}, {transform_indices = @transform_3, window_bounds = array<i64: 4, 768>}, {transform_indices = @transform_4, window_bounds = array<i64: 4, 768>}, {transform_indices = @transform_5, window_bounds = array<i64: 4, 768>}, {transform_indices = @transform_6, window_bounds = array<i64: 4, 768>}, {transform_indices = @transform_7, window_bounds = array<i64: 4, 768>}, {transform_indices = @transform_8, window_bounds = array<i64: 4, 768>}, {transform_indices = @transform_9, window_bounds = array<i64: 4, 768>}, {transform_indices = @transform_10, window_bounds = array<i64: 4, 768>}, {transform_indices = @transform_11, window_bounds = array<i64: 4, 768>}]} {
    %c0 = arith.constant 0 : index
    %c0_0 = arith.constant 0 : index
    %0 = vector.load %arg1[%c0, %c0_0] : memref<6x768xbf16, #tpu.memory_space<vmem>>, vector<6x768xbf16>
    %1 = arith.extf %0 : vector<6x768xbf16> to vector<6x768xf32>
    %cst = arith.constant 0.000000e+00 : f32
    %2 = vector.broadcast %cst : f32 to vector<12x768xf32>
    %c19_i32 = arith.constant 19 : i32
    %3 = tpu.dynamic_rotate %1 by %c19_i32 dim 1 : vector<6x768xf32>, i32 -> vector<6x768xf32>
    %c0_1 = arith.constant 0 : index
    %c0_2 = arith.constant 0 : index
    %c0_3 = arith.constant 0 : index
    %4 = vector.load %arg2[%c0_1, %c0_2, %c0_3] : memref<9x12x6xf32, #tpu.memory_space<vmem>>, vector<1x12x6xf32>
    %5 = vector.shape_cast %4 : vector<1x12x6xf32> to vector<12x6xf32>
    %cst_4 = arith.constant dense<0.000000e+00> : vector<12x768xf32>
    %6 = tpu.matmul %5, %3, %cst_4 {dimension_numbers = #tpu.dot_dimension_numbers<[1], [0], [0], [1], [0, 0, 1, 1], [], []>} : vector<12x6xf32>, vector<6x768xf32>, vector<12x768xf32> -> vector<12x768xf32>
    %7 = arith.addf %2, %6 : vector<12x768xf32>
    %c18_i32 = arith.constant 18 : i32
    %8 = tpu.dynamic_rotate %1 by %c18_i32 dim 1 : vector<6x768xf32>, i32 -> vector<6x768xf32>
    %c1 = arith.constant 1 : index
    %c0_5 = arith.constant 0 : index
    %c0_6 = arith.constant 0 : index
    %9 = vector.load %arg2[%c1, %c0_5, %c0_6] : memref<9x12x6xf32, #tpu.memory_space<vmem>>, vector<1x12x6xf32>
    %10 = vector.shape_cast %9 : vector<1x12x6xf32> to vector<12x6xf32>
    %cst_7 = arith.constant dense<0.000000e+00> : vector<12x768xf32>
    %11 = tpu.matmul %10, %8, %cst_7 {dimension_numbers = #tpu.dot_dimension_numbers<[1], [0], [0], [1], [0, 0, 1, 1], [], []>} : vector<12x6xf32>, vector<6x768xf32>, vector<12x768xf32> -> vector<12x768xf32>
    %12 = arith.addf %7, %11 : vector<12x768xf32>
    %c17_i32 = arith.constant 17 : i32
    %13 = tpu.dynamic_rotate %1 by %c17_i32 dim 1 : vector<6x768xf32>, i32 -> vector<6x768xf32>
    %c2 = arith.constant 2 : index
    %c0_8 = arith.constant 0 : index
    %c0_9 = arith.constant 0 : index
    %14 = vector.load %arg2[%c2, %c0_8, %c0_9] : memref<9x12x6xf32, #tpu.memory_space<vmem>>, vector<1x12x6xf32>
    %15 = vector.shape_cast %14 : vector<1x12x6xf32> to vector<12x6xf32>
    %cst_10 = arith.constant dense<0.000000e+00> : vector<12x768xf32>
    %16 = tpu.matmul %15, %13, %cst_10 {dimension_numbers = #tpu.dot_dimension_numbers<[1], [0], [0], [1], [0, 0, 1, 1], [], []>} : vector<12x6xf32>, vector<6x768xf32>, vector<12x768xf32> -> vector<12x768xf32>
    %17 = arith.addf %12, %16 : vector<12x768xf32>
    %c1_i32 = arith.constant 1 : i32
    %18 = tpu.dynamic_rotate %1 by %c1_i32 dim 1 : vector<6x768xf32>, i32 -> vector<6x768xf32>
    %c3 = arith.constant 3 : index
    %c0_11 = arith.constant 0 : index
    %c0_12 = arith.constant 0 : index
    %19 = vector.load %arg2[%c3, %c0_11, %c0_12] : memref<9x12x6xf32, #tpu.memory_space<vmem>>, vector<1x12x6xf32>
    %20 = vector.shape_cast %19 : vector<1x12x6xf32> to vector<12x6xf32>
    %cst_13 = arith.constant dense<0.000000e+00> : vector<12x768xf32>
    %21 = tpu.matmul %20, %18, %cst_13 {dimension_numbers = #tpu.dot_dimension_numbers<[1], [0], [0], [1], [0, 0, 1, 1], [], []>} : vector<12x6xf32>, vector<6x768xf32>, vector<12x768xf32> -> vector<12x768xf32>
    %22 = arith.addf %17, %21 : vector<12x768xf32>
    %c4 = arith.constant 4 : index
    %c0_14 = arith.constant 0 : index
    %c0_15 = arith.constant 0 : index
    %23 = vector.load %arg2[%c4, %c0_14, %c0_15] : memref<9x12x6xf32, #tpu.memory_space<vmem>>, vector<1x12x6xf32>
    %24 = vector.shape_cast %23 : vector<1x12x6xf32> to vector<12x6xf32>
    %cst_16 = arith.constant dense<0.000000e+00> : vector<12x768xf32>
    %25 = tpu.matmul %24, %1, %cst_16 {dimension_numbers = #tpu.dot_dimension_numbers<[1], [0], [0], [1], [0, 0, 1, 1], [], []>} : vector<12x6xf32>, vector<6x768xf32>, vector<12x768xf32> -> vector<12x768xf32>
    %26 = arith.addf %22, %25 : vector<12x768xf32>
    %c767_i32 = arith.constant 767 : i32
    %27 = tpu.dynamic_rotate %1 by %c767_i32 dim 1 : vector<6x768xf32>, i32 -> vector<6x768xf32>
    %c5 = arith.constant 5 : index
    %c0_17 = arith.constant 0 : index
    %c0_18 = arith.constant 0 : index
    %28 = vector.load %arg2[%c5, %c0_17, %c0_18] : memref<9x12x6xf32, #tpu.memory_space<vmem>>, vector<1x12x6xf32>
    %29 = vector.shape_cast %28 : vector<1x12x6xf32> to vector<12x6xf32>
    %cst_19 = arith.constant dense<0.000000e+00> : vector<12x768xf32>
    %30 = tpu.matmul %29, %27, %cst_19 {dimension_numbers = #tpu.dot_dimension_numbers<[1], [0], [0], [1], [0, 0, 1, 1], [], []>} : vector<12x6xf32>, vector<6x768xf32>, vector<12x768xf32> -> vector<12x768xf32>
    %31 = arith.addf %26, %30 : vector<12x768xf32>
    %c751_i32 = arith.constant 751 : i32
    %32 = tpu.dynamic_rotate %1 by %c751_i32 dim 1 : vector<6x768xf32>, i32 -> vector<6x768xf32>
    %c6 = arith.constant 6 : index
    %c0_20 = arith.constant 0 : index
    %c0_21 = arith.constant 0 : index
    %33 = vector.load %arg2[%c6, %c0_20, %c0_21] : memref<9x12x6xf32, #tpu.memory_space<vmem>>, vector<1x12x6xf32>
    %34 = vector.shape_cast %33 : vector<1x12x6xf32> to vector<12x6xf32>
    %cst_22 = arith.constant dense<0.000000e+00> : vector<12x768xf32>
    %35 = tpu.matmul %34, %32, %cst_22 {dimension_numbers = #tpu.dot_dimension_numbers<[1], [0], [0], [1], [0, 0, 1, 1], [], []>} : vector<12x6xf32>, vector<6x768xf32>, vector<12x768xf32> -> vector<12x768xf32>
    %36 = arith.addf %31, %35 : vector<12x768xf32>
    %c750_i32 = arith.constant 750 : i32
    %37 = tpu.dynamic_rotate %1 by %c750_i32 dim 1 : vector<6x768xf32>, i32 -> vector<6x768xf32>
    %c7 = arith.constant 7 : index
    %c0_23 = arith.constant 0 : index
    %c0_24 = arith.constant 0 : index
    %38 = vector.load %arg2[%c7, %c0_23, %c0_24] : memref<9x12x6xf32, #tpu.memory_space<vmem>>, vector<1x12x6xf32>
    %39 = vector.shape_cast %38 : vector<1x12x6xf32> to vector<12x6xf32>
    %cst_25 = arith.constant dense<0.000000e+00> : vector<12x768xf32>
    %40 = tpu.matmul %39, %37, %cst_25 {dimension_numbers = #tpu.dot_dimension_numbers<[1], [0], [0], [1], [0, 0, 1, 1], [], []>} : vector<12x6xf32>, vector<6x768xf32>, vector<12x768xf32> -> vector<12x768xf32>
    %41 = arith.addf %36, %40 : vector<12x768xf32>
    %c749_i32 = arith.constant 749 : i32
    %42 = tpu.dynamic_rotate %1 by %c749_i32 dim 1 : vector<6x768xf32>, i32 -> vector<6x768xf32>
    %c8 = arith.constant 8 : index
    %c0_26 = arith.constant 0 : index
    %c0_27 = arith.constant 0 : index
    %43 = vector.load %arg2[%c8, %c0_26, %c0_27] : memref<9x12x6xf32, #tpu.memory_space<vmem>>, vector<1x12x6xf32>
    %44 = vector.shape_cast %43 : vector<1x12x6xf32> to vector<12x6xf32>
    %cst_28 = arith.constant dense<0.000000e+00> : vector<12x768xf32>
    %45 = tpu.matmul %44, %42, %cst_28 {dimension_numbers = #tpu.dot_dimension_numbers<[1], [0], [0], [1], [0, 0, 1, 1], [], []>} : vector<12x6xf32>, vector<6x768xf32>, vector<12x768xf32> -> vector<12x768xf32>
    %46 = arith.addf %41, %45 : vector<12x768xf32>
    %c0_29 = arith.constant 0 : index
    %c0_30 = arith.constant 0 : index
    %47 = vector.load %arg3[%c0_29, %c0_30] : memref<12x1xf32, #tpu.memory_space<vmem>>, vector<12x1xf32>
    %48 = vector.broadcast %47 : vector<12x1xf32> to vector<12x768xf32>
    %49 = arith.addf %46, %48 : vector<12x768xf32>
    %50 = vector.extract_strided_slice %49 {offsets = [0, 0], sizes = [4, 768], strides = [1, 1]} : vector<12x768xf32> to vector<4x768xf32>
    %51 = vector.extract_strided_slice %49 {offsets = [4, 0], sizes = [4, 768], strides = [1, 1]} : vector<12x768xf32> to vector<4x768xf32>
    %52 = vector.extract_strided_slice %49 {offsets = [8, 0], sizes = [4, 768], strides = [1, 1]} : vector<12x768xf32> to vector<4x768xf32>
    %cst_31 = arith.constant 0.000000e+00 : f32
    %53 = vector.broadcast %cst_31 : f32 to vector<4x768xf32>
    %54 = arith.maximumf %52, %53 : vector<4x768xf32>
    %c0_32 = arith.constant 0 : index
    %c0_33 = arith.constant 0 : index
    %55 = vector.load %arg6[%c0_32, %c0_33] : memref<4x768xbf16, #tpu.memory_space<vmem>>, vector<4x768xbf16>
    %56 = arith.extf %55 : vector<4x768xbf16> to vector<4x768xf32>
    %c0_34 = arith.constant 0 : index
    %c0_35 = arith.constant 0 : index
    %57 = vector.load %arg7[%c0_34, %c0_35] : memref<4x768xbf16, #tpu.memory_space<vmem>>, vector<4x768xbf16>
    %58 = arith.extf %57 : vector<4x768xbf16> to vector<4x768xf32>
    %c0_36 = arith.constant 0 : index
    %c0_37 = arith.constant 0 : index
    %59 = vector.load %arg4[%c0_36, %c0_37] : memref<4x768xf32, #tpu.memory_space<vmem>>, vector<4x768xf32>
    %cst_38 = arith.constant 3.000000e-01 : f32
    %60 = vector.broadcast %cst_38 : f32 to vector<4x768xf32>
    %61 = arith.mulf %59, %60 : vector<4x768xf32>
    %c0_39 = arith.constant 0 : index
    %c0_40 = arith.constant 0 : index
    %62 = vector.load %arg5[%c0_39, %c0_40] : memref<4x768xf32, #tpu.memory_space<vmem>>, vector<4x768xf32>
    %cst_41 = arith.constant 1.000000e+00 : f32
    %63 = vector.broadcast %cst_41 : f32 to vector<4x768xf32>
    %64 = arith.subf %63, %62 : vector<4x768xf32>
    %65 = arith.mulf %61, %64 : vector<4x768xf32>
    %66 = arith.addf %65, %50 : vector<4x768xf32>
    %cst_42 = arith.constant 5.000000e-01 : f32
    %67 = vector.broadcast %cst_42 : f32 to vector<4x768xf32>
    %68 = arith.subf %66, %67 : vector<4x768xf32>
    %cst_43 = arith.constant 0.000000e+00 : f32
    %69 = vector.broadcast %cst_43 : f32 to vector<4x768xf32>
    %70 = arith.cmpf ogt, %68, %69 : vector<4x768xf32>
    %71 = arith.extui %70 : vector<4x768xi1> to vector<4x768xi32>
    %72 = arith.sitofp %71 : vector<4x768xi32> to vector<4x768xf32>
    %73 = arith.mulf %66, %56 : vector<4x768xf32>
    %74 = arith.mulf %72, %56 : vector<4x768xf32>
    %c0_44 = arith.constant 0 : index
    %c0_45 = arith.constant 0 : index
    %75 = vector.load %arg8[%c0_44, %c0_45] : memref<4x768xf32, #tpu.memory_space<vmem>>, vector<4x768xf32>
    tpu.vector_store %arg8[%c0_44, %c0_45], %73 {strides = array<i32>} : memref<4x768xf32, #tpu.memory_space<vmem>>, vector<4x768xf32>,
    %c0_46 = arith.constant 0 : index
    %c0_47 = arith.constant 0 : index
    %76 = vector.load %arg9[%c0_46, %c0_47] : memref<4x768xf32, #tpu.memory_space<vmem>>, vector<4x768xf32>
    tpu.vector_store %arg9[%c0_46, %c0_47], %74 {strides = array<i32>} : memref<4x768xf32, #tpu.memory_space<vmem>>, vector<4x768xf32>,
    %77 = arith.addf %51, %54 : vector<4x768xf32>
    %78 = math.tanh %77 : vector<4x768xf32>
    %79 = arith.mulf %78, %58 : vector<4x768xf32>
    %c0_48 = arith.constant 0 : index
    %c0_49 = arith.constant 0 : index
    %80 = vector.load %arg10[%c0_48, %c0_49] : memref<4x768xf32, #tpu.memory_space<vmem>>, vector<4x768xf32>
    tpu.vector_store %arg10[%c0_48, %c0_49], %79 {strides = array<i32>} : memref<4x768xf32, #tpu.memory_space<vmem>>, vector<4x768xf32>,
    %c767_i32_50 = arith.constant 767 : i32
    %81 = tpu.dynamic_rotate %74 by %c767_i32_50 dim 1 : vector<4x768xf32>, i32 -> vector<4x768xf32>
    %82 = arith.addf %74, %81 : vector<4x768xf32>
    %c750_i32_51 = arith.constant 750 : i32
    %83 = tpu.dynamic_rotate %74 by %c750_i32_51 dim 1 : vector<4x768xf32>, i32 -> vector<4x768xf32>
    %84 = arith.addf %82, %83 : vector<4x768xf32>
    %c749_i32_52 = arith.constant 749 : i32
    %85 = tpu.dynamic_rotate %74 by %c749_i32_52 dim 1 : vector<4x768xf32>, i32 -> vector<4x768xf32>
    %86 = arith.addf %84, %85 : vector<4x768xf32>
    %cst_53 = arith.constant 2.500000e-01 : f32
    %87 = vector.broadcast %cst_53 : f32 to vector<4x768xf32>
    %88 = arith.mulf %86, %87 : vector<4x768xf32>
    %c0_54 = arith.constant 0 : index
    %c0_55 = arith.constant 0 : index
    %89 = vector.load %arg11[%c0_54, %c0_55] : memref<4x768xf32, #tpu.memory_space<vmem>>, vector<4x768xf32>
    tpu.vector_store %arg11[%c0_54, %c0_55], %88 {strides = array<i32>} : memref<4x768xf32, #tpu.memory_space<vmem>>, vector<4x768xf32>,
    %c767_i32_56 = arith.constant 767 : i32
    %90 = tpu.dynamic_rotate %79 by %c767_i32_56 dim 1 : vector<4x768xf32>, i32 -> vector<4x768xf32>
    %91 = arith.addf %79, %90 : vector<4x768xf32>
    %c750_i32_57 = arith.constant 750 : i32
    %92 = tpu.dynamic_rotate %79 by %c750_i32_57 dim 1 : vector<4x768xf32>, i32 -> vector<4x768xf32>
    %93 = arith.addf %91, %92 : vector<4x768xf32>
    %c749_i32_58 = arith.constant 749 : i32
    %94 = tpu.dynamic_rotate %79 by %c749_i32_58 dim 1 : vector<4x768xf32>, i32 -> vector<4x768xf32>
    %95 = arith.addf %93, %94 : vector<4x768xf32>
    %cst_59 = arith.constant 2.500000e-01 : f32
    %96 = vector.broadcast %cst_59 : f32 to vector<4x768xf32>
    %97 = arith.mulf %95, %96 : vector<4x768xf32>
    %c0_60 = arith.constant 0 : index
    %c0_61 = arith.constant 0 : index
    %98 = vector.load %arg12[%c0_60, %c0_61] : memref<4x768xf32, #tpu.memory_space<vmem>>, vector<4x768xf32>
    tpu.vector_store %arg12[%c0_60, %c0_61], %97 {strides = array<i32>} : memref<4x768xf32, #tpu.memory_space<vmem>>, vector<4x768xf32>,
    return
  }
  func.func @transform_0(%arg0: i32) -> (i32, i32) {
    %c0_i32 = arith.constant 0 : i32
    %c0_i32_0 = arith.constant 0 : i32
    return %c0_i32, %arg0 : i32, i32
  }
  func.func @transform_1(%arg0: i32) -> (i32, i32, i32) {
    %c0_i32 = arith.constant 0 : i32
    %c0_i32_0 = arith.constant 0 : i32
    %c0_i32_1 = arith.constant 0 : i32
    %c0_i32_2 = arith.constant 0 : i32
    return %c0_i32, %c0_i32_0, %c0_i32_1 : i32, i32, i32
  }
  func.func @transform_2(%arg0: i32) -> (i32, i32) {
    %c0_i32 = arith.constant 0 : i32
    %c0_i32_0 = arith.constant 0 : i32
    %c0_i32_1 = arith.constant 0 : i32
    return %c0_i32, %c0_i32_0 : i32, i32
  }
  func.func @transform_3(%arg0: i32) -> (i32, i32) {
    %c0_i32 = arith.constant 0 : i32
    %c0_i32_0 = arith.constant 0 : i32
    return %c0_i32, %arg0 : i32, i32
  }
  func.func @transform_4(%arg0: i32) -> (i32, i32) {
    %c0_i32 = arith.constant 0 : i32
    %c0_i32_0 = arith.constant 0 : i32
    return %c0_i32, %arg0 : i32, i32
  }
  func.func @transform_5(%arg0: i32) -> (i32, i32) {
    %c0_i32 = arith.constant 0 : i32
    %c0_i32_0 = arith.constant 0 : i32
    return %c0_i32, %arg0 : i32, i32
  }
  func.func @transform_6(%arg0: i32) -> (i32, i32) {
    %c0_i32 = arith.constant 0 : i32
    %c0_i32_0 = arith.constant 0 : i32
    return %c0_i32, %arg0 : i32, i32
  }
  func.func @transform_7(%arg0: i32) -> (i32, i32) {
    %c0_i32 = arith.constant 0 : i32
    %c0_i32_0 = arith.constant 0 : i32
    return %c0_i32, %arg0 : i32, i32
  }
  func.func @transform_8(%arg0: i32) -> (i32, i32) {
    %c0_i32 = arith.constant 0 : i32
    %c0_i32_0 = arith.constant 0 : i32
    return %c0_i32, %arg0 : i32, i32
  }
  func.func @transform_9(%arg0: i32) -> (i32, i32) {
    %c0_i32 = arith.constant 0 : i32
    %c0_i32_0 = arith.constant 0 : i32
    return %c0_i32, %arg0 : i32, i32
  }
  func.func @transform_10(%arg0: i32) -> (i32, i32) {
    %c0_i32 = arith.constant 0 : i32
    %c0_i32_0 = arith.constant 0 : i32
    return %c0_i32, %arg0 : i32, i32
  }
  func.func @transform_11(%arg0: i32) -> (i32, i32) {
    %c0_i32 = arith.constant 0 : i32
    %c0_i32_0 = arith.constant 0 : i32
    return %c0_i32, %arg0 : i32, i32
  }
}

</mosaic_0001>

<bundles_post_ra>
// kernel: hybrid_layer2_forward.1
= control target key start
LH: loop header
LB: loop body
LE: loop exit
PB: predicated region body
PF: predicated region fallthrough
CT: control target
= control target key end

     0   :  { %s2589_s21 = smov 18   ;;  %s2590_s24 = smov 19   ;;  %v52_v12 = vlaneseq  ;;  %vm92_vm1 = vcmask 1045504   ;;  %vm85_vm3 = vcmask 48128   ;;  %vm1828_vm10 = vcmask 1043456   ;;  %s3546_s0 = inlined_call_operand.vmem [shape: bf16[6,768], index: 0, kind: input, shape index: {}]   ;;  %s3547_s1 = inlined_call_operand.vmem [shape: f32[9,12,6], index: 1, kind: input, shape index: {}]   ;;  %s3548_s2 = inlined_call_operand.vmem [shape: f32[12,1], index: 2, kind: input, shape index: {}]   ;;  %s3549_s6 = inlined_call_operand.vmem [shape: bf16[4,768], index: 6, kind: input, shape index: {}]   ;;  %s3550_s3 = inlined_call_operand.vmem [shape: f32[4,768], index: 3, kind: input, shape index: {}, may-alias: {3,7}]   ;;  %s3551_s4 = inlined_call_operand.vmem [shape: f32[4,768], index: 4, kind: input, shape index: {}, may-alias: {4,8}]   ;;  %s3552_s5 = inlined_call_operand.vmem [shape: bf16[4,768], index: 5, kind: input, shape index: {}]   ;;  %s3553_s7 = inlined_call_operand.vmem [shape: f32[4,768], index: 7, kind: output, shape index: {0}, may-alias: {3,7}]   ;;  %s3554_s8 = inlined_call_operand.vmem [shape: f32[4,768], index: 8, kind: output, shape index: {1}, may-alias: {4,8}]   ;;  %s3555_s9 = inlined_call_operand.vmem [shape: f32[4,768], index: 9, kind: output, shape index: {2}]   ;;  %s3556_s11 = inlined_call_operand.vmem [shape: f32[4,768], index: 11, kind: output, shape index: {4}]   ;;  %s3557_s10 = inlined_call_operand.vmem [shape: f32[4,768], index: 10, kind: output, shape index: {3}]  }
   0x1   :  { %v32_v0 = vld [vmem:[%s3546_s0 + $0x8] sm:$0x77]  ;;  %v2665_v1 = vld [vmem:[%s3546_s0] sm:$0x77]  ;;  %v33_v8 = vld [vmem:[%s3546_s0 + $0x10] sm:$0x77] }
   0x2   :  { %v2667_v2 = vunpack.c.l.bf16 %v32_v0  ;;  %v2669_v3 = vunpack.c.h.bf16 %v32_v0  ;;  %v34_v4 = vunpack.c.l.bf16 %v2665_v1  ;;  %v35_v5 = vunpack.c.h.bf16 %v2665_v1  ;;  %s2591_s25 = smov 17   ;;  %s2592_s0 = smov 1   ;;  %v2299_v23 = vld [vmem:[%s3547_s1 + $0x10] sm:$0xff]  ;;  %v2730_v24 = vld [vmem:[%s3547_s1 + $0x18] sm:$0xf]  ;;  %v61_v54 = vld [vmem:[%s3547_s1] sm:$0xff] }
   0x3   :  { %v2686_v9 = vunpack.c.l.bf16 %v33_v8  ;;  %v2688_v10 = vunpack.c.h.bf16 %v33_v8  ;;  %s2593_s26 = smov 127   ;;  %s2594_s27 = smov 111   ;;  %v2718_v14 = vand.u32 127, %v52_v12  ;;  %v62_v59 = vld [vmem:[%s3547_s1 + $0x8] sm:$0xf] }
   0x4   :  { %v2500_v6 = vpack.i.bf16 %v2669_v3, %v2667_v2  ;;  %v2679_v7 = vpack.i.bf16 %v35_v5, %v34_v4  ;;  %s2595_s28 = smov 110   ;;  %s2596_s14 = smov 109   ;;  %v2358_v1 = vld [vmem:[%s3547_s1 + $0x38] sm:$0xf] }
   0x5   :  { %v2706_v11 = vpack.i.bf16 %v2686_v9, %v2669_v3  ;;  %vm75_vm0 = vcmp.lt.s32.totalorder %v2718_v14, 18  ;;  %vm54_vm2 = vcmp.lt.s32.totalorder %v2718_v14, 19  ;;  %vm423_vm4 = vcmp.lt.s32.totalorder %v2718_v14, 17 }
   0x6   :  { %2501 = vrot.lane.b32.xlu1 %v2500_v6, %s2589_s21  ;;  %2496 = vrot.lane.b32.xlu0 %v2679_v7, %s2589_s21  ;;  %vm619_vm5 = vcmp.lt.s32.totalorder %v2718_v14, 1  ;;  %vm992_vm6 = vcmp.lt.s32.totalorder %v2718_v14, 127  ;;  %vm1188_vm7 = vcmp.lt.s32.totalorder %v2718_v14, 111  ;;  %vm1384_vm8 = vcmp.lt.s32.totalorder %v2718_v14, 110 }
   0x7   :  { %2506 = vrot.lane.b32.xlu2 %v2679_v7, %s2590_s24  ;;  %vm1580_vm9 = vcmp.lt.s32.totalorder %v2718_v14, 109 }
   0xe   :  { %71 = vrot.lane.b32.xlu1 %v2686_v9, %s2589_s21  ;;  %73 = vrot.lane.b32.xlu0 %v2688_v10, %s2589_s21 }
   0xf   :  { %50 = vrot.lane.b32.xlu2 %v2688_v10, %s2590_s24 }
  0x16   :  { %2511 = vrot.lane.b32.xlu0 %v2500_v6, %s2590_s24  ;;  %48 = vrot.lane.b32.xlu1 %v2686_v9, %s2590_s24 }
  0x17   :  { %2516 = vrot.lane.b32.xlu2 %v2679_v7, %s2591_s25 }
  0x1e   :  { %2521 = vrot.lane.b32.xlu1 %v2500_v6, %s2591_s25  ;;  %421 = vrot.lane.b32.xlu0 %v2688_v10, %s2591_s25 }
  0x1f   :  { %419 = vrot.lane.b32.xlu2 %v2686_v9, %s2591_s25 }
  0x26   :  { %2526 = vrot.lane.b32.xlu0 %v2679_v7, %s2592_s0  ;;  %617 = vrot.lane.b32.xlu1 %v2688_v10, %s2592_s0 }
  0x27   :  { %2531 = vrot.lane.b32.xlu2 %v2500_v6, %s2592_s0 }
  0x2e   :  { %615 = vrot.lane.b32.xlu0 %v2686_v9, %s2592_s0  ;;  %2536 = vrot.lane.b32.xlu1 %v2679_v7, %s2593_s26 }
  0x2f   :  { %984 = vrot.lane.b32.xlu2 %v2667_v2, %s2593_s26 }
  0x36   :  { %2541 = vrot.lane.b32.xlu0 %v2706_v11, %s2593_s26  ;;  %990 = vrot.lane.b32.xlu1 %v2688_v10, %s2593_s26 }
  0x37   :  { %2546 = vrot.lane.b32.xlu2 %v2679_v7, %s2594_s27 }
  0x3e   :  { %1180 = vrot.lane.b32.xlu0 %v2667_v2, %s2594_s27  ;;  %2551 = vrot.lane.b32.xlu1 %v2706_v11, %s2594_s27 }
  0x3f   :  { %1186 = vrot.lane.b32.xlu2 %v2688_v10, %s2594_s27 }
  0x46   :  { %1376 = vrot.lane.b32.xlu1 %v2667_v2, %s2595_s28  ;;  %2556 = vrot.lane.b32.xlu0 %v2679_v7, %s2595_s28 }
  0x47   :  { %2561 = vrot.lane.b32.xlu2 %v2706_v11, %s2595_s28 }
  0x4e   :  { %1382 = vrot.lane.b32.xlu0 %v2688_v10, %s2595_s28  ;;  %2566 = vrot.lane.b32.xlu1 %v2679_v7, %s2596_s14  ;;  %v2337_v7 = vld [vmem:[%s3547_s1 + $0x20] sm:$0xff] }
  0x4f   :  { %1572 = vrot.lane.b32.xlu2 %v2667_v2, %s2596_s14 }
  0x56   :  { %2571 = vrot.lane.b32.xlu0 %v2706_v11, %s2596_s14  ;;  %1578 = vrot.lane.b32.xlu1 %v2688_v10, %s2596_s14 }
  0x61   :  { %v2507_v13 = vpop.permute.xlu2 %2506 }
  0x62   :  { %v2509_v17 = vunpack.i.h.bf16 %v2507_v13  ;;  %v2508_v18 = vunpack.i.l.bf16 %v2507_v13 }
  0x64   :  { %v59_v28 = vsel %vm54_vm2, %v2508_v18, %v2509_v17 }
  0x69   :  { %v51_v27 = vpop.permute.xlu2 %50 }
  0x6a   :  { %v60_v34 = vsel %vm54_vm2, %v51_v27, %v2508_v18 }
  0x71   :  { %v2517_v36 = vpop.permute.xlu2 %2516 }
  0x72   :  { %v2519_v39 = vunpack.i.h.bf16 %v2517_v36  ;;  %v2518_v40 = vunpack.i.l.bf16 %v2517_v36 }
  0x74   :  { %v428_v47 = vsel %vm423_vm4, %v2518_v40, %v2519_v39 }
  0x78   :  { %v2502_v15 = vpop.permute.xlu1 %2501  ;;  %v2497_v16 = vpop.permute.xlu0 %2496 }
  0x79   :  { %v2504_v19 = vunpack.i.h.bf16 %v2502_v15  ;;  %v2503_v20 = vunpack.i.l.bf16 %v2502_v15  ;;  %v2499_v21 = vunpack.i.h.bf16 %v2497_v16  ;;  %v2498_v22 = vunpack.i.l.bf16 %v2497_v16  ;;  %v420_v51 = vpop.permute.xlu2 %419  ;;  %v2338_v16 = vld [vmem:[%s3547_s1 + $0x28] sm:$0xf] }
  0x7b   :  { %v80_v25 = vsel %vm75_vm0, %v2498_v22, %v2499_v21  ;;  %v78_v26 = vsel %vm75_vm0, %v2503_v20, %v2504_v19  ;;  %v79_v35 = vsel %vm75_vm0, %v2499_v21, %v2503_v20 }
  0x7c   :  { %2304 = vmatpush.msk.msra.mxu1 %vm92_vm1, %v80_v25  ;;  %2484 = vmatpush.msk.msra.mxu3 %vm92_vm1, %v80_v25 }
  0x7d   :  { %2305 = vmatmul.msk.f32.vlgmr.msra.gmra.mxu1 %vm85_vm3, %v2299_v23  ;;  %2306 = vmatmul.msk.f32.vlgmr.msra.gmra.mxu3 %vm85_vm3, %v2730_v24 }
  0x7e   :  { %2310 = vmatpush.msk.msrb.mxu3 %vm92_vm1, %v78_v26 }
  0x80   :  { %2322 = vmatpush.msk.msra.mxu3 %vm92_vm1, %v59_v28  ;;  %v72_v29 = vpop.permute.xlu1 %71  ;;  %v74_v30 = vpop.permute.xlu0 %73 }
  0x81   :  { %v81_v31 = vsel %vm75_vm0, %v74_v30, %v2498_v22  ;;  %v76_v32 = vsel %vm75_vm0, %v72_v29, %v74_v30  ;;  %v77_v33 = vsel %vm75_vm0, %v2504_v19, %v72_v29  ;;  %v2532_v61 = vpop.permute.xlu2 %2531 }
  0x82   :  { %2301 = vmatpush.msk.msra.mxu0 %vm92_vm1, %v81_v31  ;;  %2483 = vmatpush.msk.msra.mxu2 %vm92_vm1, %v81_v31  ;;  %v2534_v0 = vunpack.i.h.bf16 %v2532_v61  ;;  %v2533_v6 = vunpack.i.l.bf16 %v2532_v61 }
  0x83   :  { %2316 = vmatpush.msk.msrb.mxu1 %vm92_vm1, %v76_v32  ;;  %2302 = vmatmul.msk.f32.vlgmr.msra.gmra.mxu0 %vm85_vm3, %v2299_v23 }
  0x84   :  { %2303 = vmatmul.msk.f32.vlgmr.msra.gmra.mxu2 %vm85_vm3, %v2730_v24  ;;  %2313 = vmatpush.msk.msrb.mxu0 %vm92_vm1, %v77_v33  ;;  %v622_v12 = vsel %vm619_vm5, %v2533_v6, %v2534_v0 }
  0x85   :  { %2307 = vmatpush.msk.msrb.mxu2 %vm92_vm1, %v79_v35  ;;  %2311 = vmatmul.msk.f32.vlgmr.msrb.gmra.mxu3 %vm85_vm3, %v2299_v23 }
  0x86   :  { %2317 = vmatmul.msk.f32.vlgmr.msrb.gmra.mxu1 %vm85_vm3, %v2299_v23 }
  0x87   :  { %2319 = vmatpush.msk.msra.mxu2 %vm92_vm1, %v60_v34 }
  0x88   :  { %v2512_v37 = vpop.permute.xlu0 %2511  ;;  %v49_v38 = vpop.permute.xlu1 %48 }
  0x89   :  { %v2514_v41 = vunpack.i.h.bf16 %v2512_v37  ;;  %v2513_v42 = vunpack.i.l.bf16 %v2512_v37  ;;  %v55_v43 = vsel %vm54_vm2, %v49_v38, %v51_v27  ;;  %v985_v22 = vpop.permute.xlu2 %984  ;;  %v2378_v27 = vld [vmem:[%s3547_s1 + $0x48] sm:$0xf] }
  0x8a   :  { %2334 = vmatpush.msk.msrb.mxu3 %vm92_vm1, %v55_v43 }
  0x8b   :  { %v56_v44 = vsel %vm54_vm2, %v2514_v41, %v49_v38  ;;  %2314 = vmatmul.msk.f32.vlgmr.msrb.gmra.mxu0 %vm85_vm3, %v2299_v23  ;;  %v58_v45 = vsel %vm54_vm2, %v2509_v17, %v2513_v42  ;;  %v57_v46 = vsel %vm54_vm2, %v2513_v42, %v2514_v41  ;;  %v2397_v41 = vld [vmem:[%s3547_s1 + $0x50] sm:$0xff] }
  0x8c   :  { %2308 = vmatmul.msk.f32.vlgmr.msrb.gmra.mxu2 %vm85_vm3, %v2299_v23  ;;  %2325 = vmatpush.msk.msra.mxu0 %vm92_vm1, %v58_v45 }
  0x8d   :  { %2328 = vmatpush.msk.msra.mxu1 %vm92_vm1, %v57_v46  ;;  %2331 = vmatpush.msk.msrb.mxu2 %vm92_vm1, %v56_v44 }
  0x8e   :  { %2312 = vmatmul.msk.f32.gmra.mxu3 %vm85_vm3, %v2730_v24  ;;  %2318 = vmatmul.msk.f32.gmra.mxu1 %vm85_vm3, %v2730_v24 }
  0x8f   :  { %2342 = vmatpush.msk.msrb.mxu1 %vm92_vm1, %v428_v47  ;;  %v2398_v47 = vld [vmem:[%s3547_s1 + $0x58] sm:$0xf] }
  0x90   :  { %v2522_v48 = vpop.permute.xlu1 %2521  ;;  %v422_v49 = vpop.permute.xlu0 %421 }
  0x91   :  { %v2524_v50 = vunpack.i.h.bf16 %v2522_v48  ;;  %v429_v52 = vsel %vm423_vm4, %v422_v49, %v2518_v40  ;;  %v2523_v53 = vunpack.i.l.bf16 %v2522_v48  ;;  %v424_v55 = vsel %vm423_vm4, %v420_v51, %v422_v49  ;;  %v2547_v28 = vpop.permute.xlu2 %2546 }
  0x92   :  { %2339 = vmatpush.msk.msrb.mxu0 %vm92_vm1, %v429_v52  ;;  %v2549_v29 = vunpack.i.h.bf16 %v2547_v28  ;;  %v2548_v34 = vunpack.i.l.bf16 %v2547_v28 }
  0x93   :  { %2315 = vmatmul.msk.f32.gmra.mxu0 %vm85_vm3, %v2730_v24  ;;  %v426_v56 = vsel %vm423_vm4, %v2523_v53, %v2524_v50  ;;  %v425_v57 = vsel %vm423_vm4, %v2524_v50, %v420_v51  ;;  %v427_v58 = vsel %vm423_vm4, %v2519_v39, %v2523_v53 }
  0x94   :  { %2309 = vmatmul.msk.f32.gmra.mxu2 %vm85_vm3, %v2730_v24  ;;  %v1193_v35 = vsel %vm1188_vm7, %v2548_v34, %v2549_v29 }
  0x96   :  { %2323 = vmatmul.msk.f32.vlgmr.msra.gmra.mxu3 %vm85_vm3, %v61_v54  ;;  %2329 = vmatmul.msk.f32.vlgmr.msra.gmra.mxu1 %vm85_vm3, %v61_v54 }
  0x97   :  { %2354 = vmatpush.msk.msra.mxu1 %vm92_vm1, %v424_v55  ;;  %2348 = vmatpush.msk.msra.mxu3 %vm92_vm1, %v426_v56 }
  0x98   :  { %v2527_v60 = vpop.permute.xlu0 %2526  ;;  %v618_v11 = vpop.permute.xlu1 %617 }
  0x99   :  { %v2529_v62 = vunpack.i.h.bf16 %v2527_v60  ;;  %v2528_v63 = vunpack.i.l.bf16 %v2527_v60  ;;  %v1187_v39 = vpop.permute.xlu2 %1186 }
  0x9a   :  { %v1194_v42 = vsel %vm1188_vm7, %v1187_v39, %v2548_v34 }
  0x9b   :  { %2326 = vmatmul.msk.f32.vlgmr.msra.gmra.mxu0 %vm85_vm3, %v61_v54  ;;  %v624_v8 = vsel %vm619_vm5, %v2528_v63, %v2529_v62  ;;  %v623_v13 = vsel %vm619_vm5, %v2529_v62, %v2533_v6  ;;  %v625_v15 = vsel %vm619_vm5, %v618_v11, %v2528_v63 }
  0x9c   :  { %2320 = vmatmul.msk.f32.vlgmr.msra.gmra.mxu2 %vm85_vm3, %v61_v54  ;;  %2351 = vmatpush.msk.msra.mxu0 %vm92_vm1, %v425_v57  ;;  %v2417_v57 = vld [vmem:[%s3547_s1 + $0x60] sm:$0xff] }
  0x9d   :  { %2345 = vmatpush.msk.msra.mxu2 %vm92_vm1, %v427_v58 }
  0x9e   :  { %2324 = vmatmul.msk.f32.gmra.mxu3 %vm85_vm3, %v62_v59  ;;  %2330 = vmatmul.msk.f32.gmra.mxu1 %vm85_vm3, %v62_v59 }
  0xa0   :  { %v616_v17 = vpop.permute.xlu0 %615 }
  0xa1   :  { %v620_v18 = vsel %vm619_vm5, %v616_v17, %v618_v11  ;;  %v621_v19 = vsel %vm619_vm5, %v2534_v0, %v616_v17  ;;  %v2562_v49 = vpop.permute.xlu2 %2561 }
  0xa2   :  { %v2564_v53 = vunpack.i.h.bf16 %v2562_v49 }
  0xa3   :  { %2327 = vmatmul.msk.f32.gmra.mxu0 %vm85_vm3, %v62_v59 }
  0xa4   :  { %2321 = vmatmul.msk.f32.gmra.mxu2 %vm85_vm3, %v62_v59 }
  0xa6   :  { %2335 = vmatmul.msk.f32.vlgmr.msrb.gmra.mxu3 %vm85_vm3, %v61_v54  ;;  %2343 = vmatmul.msk.f32.vlgmr.msrb.gmra.mxu1 %vm85_vm3, %v2337_v7 }
  0xa7   :  { %2362 = vmatpush.msk.msrb.mxu3 %vm92_vm1, %v624_v8  ;;  %2368 = vmatpush.msk.msrb.mxu1 %vm92_vm1, %v622_v12  ;;  %v2418_v8 = vld [vmem:[%s3547_s1 + $0x68] sm:$0xf] }
  0xa8   :  { %v2542_v20 = vpop.permute.xlu0 %2541 }
  0xa9   :  { %v2543_v21 = vunpack.i.l.bf16 %v2542_v20  ;;  %v3022_v17 = vpop.permute.xlu2 %1572 }
  0xab   :  { %2340 = vmatmul.msk.f32.vlgmr.msrb.gmra.mxu0 %vm85_vm3, %v2337_v7  ;;  %v995_v25 = vsel %vm992_vm6, %v985_v22, %v2543_v21 }
  0xac   :  { %2332 = vmatmul.msk.f32.vlgmr.msrb.gmra.mxu2 %vm85_vm3, %v61_v54  ;;  %2365 = vmatpush.msk.msrb.mxu0 %vm92_vm1, %v623_v13  ;;  %v2563_v54 = vunpack.i.l.bf16 %v2562_v49 }
  0xad   :  { %2359 = vmatpush.msk.msrb.mxu2 %vm92_vm1, %v625_v15 }
  0xae   :  { %2336 = vmatmul.msk.f32.gmra.mxu3 %vm85_vm3, %v62_v59  ;;  %2344 = vmatmul.msk.f32.gmra.mxu1 %vm85_vm3, %v2338_v16 }
  0xb0   :  { %v1181_v30 = vpop.permute.xlu0 %1180 }
  0xb1   :  { %v1192_v33 = vsel %vm1188_vm7, %v2549_v29, %v1181_v30 }
  0xb3   :  { %2341 = vmatmul.msk.f32.gmra.mxu0 %vm85_vm3, %v2338_v16 }
  0xb4   :  { %2333 = vmatmul.msk.f32.gmra.mxu2 %vm85_vm3, %v62_v59  ;;  %v1386_v59 = vsel %vm1384_vm8, %v2563_v54, %v2564_v53 }
  0xb6   :  { %2349 = vmatmul.msk.f32.vlgmr.msra.gmra.mxu3 %vm85_vm3, %v2337_v7  ;;  %2355 = vmatmul.msk.f32.vlgmr.msra.gmra.mxu1 %vm85_vm3, %v2337_v7 }
  0xb7   :  { %2374 = vmatpush.msk.msra.mxu3 %vm92_vm1, %v620_v18  ;;  %2382 = vmatpush.msk.msra.mxu1 %vm92_vm1, %v35_v5  ;;  %v2357_v5 = vld [vmem:[%s3547_s1 + $0x30] sm:$0xff] }
  0xb8   :  { %v2557_v48 = vpop.permute.xlu0 %2556 }
  0xb9   :  { %v2559_v52 = vunpack.i.h.bf16 %v2557_v48  ;;  %v2558_v60 = vunpack.i.l.bf16 %v2557_v48 }
  0xbb   :  { %2352 = vmatmul.msk.f32.vlgmr.msra.gmra.mxu0 %vm85_vm3, %v2337_v7  ;;  %v1389_v6 = vsel %vm1384_vm8, %v2558_v60, %v2559_v52 }
  0xbc   :  { %2346 = vmatmul.msk.f32.vlgmr.msra.gmra.mxu2 %vm85_vm3, %v2337_v7  ;;  %2379 = vmatpush.msk.msra.mxu0 %vm92_vm1, %v34_v4  ;;  %v2537_v4 = vpop.permute.xlu1 %2536 }
  0xbd   :  { %2371 = vmatpush.msk.msra.mxu2 %vm92_vm1, %v621_v19  ;;  %v2538_v24 = vunpack.i.l.bf16 %v2537_v4 }
  0xbe   :  { %2350 = vmatmul.msk.f32.gmra.mxu3 %vm85_vm3, %v2338_v16  ;;  %2356 = vmatmul.msk.f32.gmra.mxu1 %vm85_vm3, %v2338_v16 }
  0xc0   :  { %v1383_v19 = vpop.permute.xlu0 %1382 }
  0xc3   :  { %2353 = vmatmul.msk.f32.gmra.mxu0 %vm85_vm3, %v2338_v16 }
  0xc4   :  { %2347 = vmatmul.msk.f32.gmra.mxu2 %vm85_vm3, %v2338_v16  ;;  %v991_v31 = vpop.permute.xlu1 %990 }
  0xc5   :  { %v998_v32 = vsel %vm992_vm6, %v991_v31, %v2538_v24 }
  0xc6   :  { %2363 = vmatmul.msk.f32.vlgmr.msrb.gmra.mxu3 %vm85_vm3, %v2357_v5  ;;  %2369 = vmatmul.msk.f32.vlgmr.msrb.gmra.mxu1 %vm85_vm3, %v2357_v5 }
  0xc7   :  { %2394 = vmatpush.msk.msrb.mxu1 %vm92_vm1, %v2688_v10  ;;  %2388 = vmatpush.msk.msrb.mxu3 %vm92_vm1, %v2669_v3  ;;  %v2539_v3 = vunpack.i.h.bf16 %v2537_v4  ;;  %v2544_v10 = vunpack.i.h.bf16 %v2542_v20 }
  0xc9   :  { %v994_v23 = vsel %vm992_vm6, %v2543_v21, %v2544_v10  ;;  %v997_v26 = vsel %vm992_vm6, %v2538_v24, %v2539_v3  ;;  %v993_v36 = vsel %vm992_vm6, %v2544_v10, %v991_v31 }
  0xcb   :  { %2366 = vmatmul.msk.f32.vlgmr.msrb.gmra.mxu0 %vm85_vm3, %v2357_v5 }
  0xcc   :  { %2360 = vmatmul.msk.f32.vlgmr.msrb.gmra.mxu2 %vm85_vm3, %v2357_v5  ;;  %2391 = vmatpush.msk.msrb.mxu0 %vm92_vm1, %v2686_v9  ;;  %v2377_v9 = vld [vmem:[%s3547_s1 + $0x40] sm:$0xff]  ;;  %v2552_v37 = vpop.permute.xlu1 %2551 }
  0xcd   :  { %2385 = vmatpush.msk.msrb.mxu2 %vm92_vm1, %v2667_v2  ;;  %v996_v2 = vsel %vm992_vm6, %v2539_v3, %v985_v22  ;;  %v2554_v38 = vunpack.i.h.bf16 %v2552_v37  ;;  %v2553_v40 = vunpack.i.l.bf16 %v2552_v37 }
  0xce   :  { %2364 = vmatmul.msk.f32.gmra.mxu3 %vm85_vm3, %v2358_v1  ;;  %2370 = vmatmul.msk.f32.gmra.mxu1 %vm85_vm3, %v2358_v1 }
  0xcf   :  { %v1190_v43 = vsel %vm1188_vm7, %v2553_v40, %v2554_v38  ;;  %v1189_v44 = vsel %vm1188_vm7, %v2554_v38, %v1187_v39  ;;  %v1191_v45 = vsel %vm1188_vm7, %v1181_v30, %v2553_v40  ;;  %v2437_v38 = vld [vmem:[%s3547_s1 + $0x70] sm:$0xff]  ;;  %v2597_v39 = vmov 0  }
  0xd0   :  { %2576 = vset.pattern.permute.xlu0 %v2597_v39  ;;  %2575 = vset.pattern.permute.xlu2 %v2597_v39 }
  0xd3   :  { %2367 = vmatmul.msk.f32.gmra.mxu0 %vm85_vm3, %v2358_v1 }
  0xd4   :  { %2361 = vmatmul.msk.f32.gmra.mxu2 %vm85_vm3, %v2358_v1  ;;  %v1377_v55 = vpop.permute.xlu1 %1376 }
  0xd5   :  { %v1388_v58 = vsel %vm1384_vm8, %v2559_v52, %v1377_v55  ;;  %v1387_v0 = vsel %vm1384_vm8, %v1377_v55, %v2563_v54  ;;  %v2438_v52 = vld [vmem:[%s3547_s1 + $0x78] sm:$0xf] }
  0xd6   :  { %2375 = vmatmul.msk.f32.vlgmr.msra.gmra.mxu3 %vm85_vm3, %v2357_v5  ;;  %2383 = vmatmul.msk.f32.vlgmr.msra.gmra.mxu1 %vm85_vm3, %v2377_v9 }
  0xd7   :  { %2402 = vmatpush.msk.msra.mxu3 %vm92_vm1, %v996_v2  ;;  %2408 = vmatpush.msk.msra.mxu1 %vm92_vm1, %v994_v23  ;;  %v1385_v23 = vsel %vm1384_vm8, %v2564_v53, %v1383_v19 }
  0xdb   :  { %2380 = vmatmul.msk.f32.vlgmr.msra.gmra.mxu0 %vm85_vm3, %v2377_v9 }
  0xdc   :  { %2372 = vmatmul.msk.f32.vlgmr.msra.gmra.mxu2 %vm85_vm3, %v2357_v5  ;;  %2405 = vmatpush.msk.msra.mxu0 %vm92_vm1, %v995_v25  ;;  %v2567_v12 = vpop.permute.xlu1 %2566 }
  0xdd   :  { %2399 = vmatpush.msk.msra.mxu2 %vm92_vm1, %v997_v26  ;;  %v2569_v15 = vunpack.i.h.bf16 %v2567_v12  ;;  %v2568_v20 = vunpack.i.l.bf16 %v2567_v12 }
  0xde   :  { %2376 = vmatmul.msk.f32.gmra.mxu3 %vm85_vm3, %v2358_v1  ;;  %2384 = vmatmul.msk.f32.gmra.mxu1 %vm85_vm3, %v2378_v27 }
  0xdf   :  { %v1584_v4 = vsel %vm1580_vm9, %v2569_v15, %v3022_v17 }
  0xe3   :  { %2381 = vmatmul.msk.f32.gmra.mxu0 %vm85_vm3, %v2378_v27 }
  0xe4   :  { %2373 = vmatmul.msk.f32.gmra.mxu2 %vm85_vm3, %v2358_v1  ;;  %v1390_v1 = vsel %vm1384_vm8, %v1383_v19, %v2558_v60 }
  0xe6   :  { %2389 = vmatmul.msk.f32.vlgmr.msrb.gmra.mxu3 %vm85_vm3, %v2377_v9  ;;  %2395 = vmatmul.msk.f32.vlgmr.msrb.gmra.mxu1 %vm85_vm3, %v2377_v9 }
  0xe7   :  { %2414 = vmatpush.msk.msrb.mxu3 %vm92_vm1, %v998_v32  ;;  %2422 = vmatpush.msk.msrb.mxu1 %vm92_vm1, %v1192_v33  ;;  %v1579_v33 = vpop.permute.xlu1 %1578 }
  0xeb   :  { %2392 = vmatmul.msk.f32.vlgmr.msrb.gmra.mxu0 %vm85_vm3, %v2377_v9 }
  0xec   :  { %2386 = vmatmul.msk.f32.vlgmr.msrb.gmra.mxu2 %vm85_vm3, %v2377_v9  ;;  %2419 = vmatpush.msk.msrb.mxu0 %vm92_vm1, %v1193_v35  ;;  %v1585_v9 = vsel %vm1580_vm9, %v2568_v20, %v2569_v15  ;;  %v2458_v15 = vld [vmem:[%s3547_s1 + $0x88] sm:$0xf] }
  0xed   :  { %2411 = vmatpush.msk.msrb.mxu2 %vm92_vm1, %v993_v36  ;;  %v1764_v36 = vld [vmem:[%s3548_s2] sm:$0xff] }
  0xee   :  { %2390 = vmatmul.msk.f32.gmra.mxu3 %vm85_vm3, %v2378_v27  ;;  %2396 = vmatmul.msk.f32.gmra.mxu1 %vm85_vm3, %v2378_v27 }
  0xef   :  { %1768 = vperm.xlu0 %2576, %v1764_v36  }
  0xf3   :  { %2393 = vmatmul.msk.f32.gmra.mxu0 %vm85_vm3, %v2378_v27 }
  0xf4   :  { %2387 = vmatmul.msk.f32.gmra.mxu2 %vm85_vm3, %v2378_v27  ;;  %v2572_v27 = vpop.permute.xlu0 %2571 }
  0xf5   :  { %v2574_v30 = vunpack.i.h.bf16 %v2572_v27  ;;  %v2573_v35 = vunpack.i.l.bf16 %v2572_v27 }
  0xf6   :  { %2403 = vmatmul.msk.f32.vlgmr.msra.gmra.mxu3 %vm85_vm3, %v2397_v41  ;;  %2409 = vmatmul.msk.f32.vlgmr.msra.gmra.mxu1 %vm85_vm3, %v2397_v41 }
  0xf7   :  { %2434 = vmatpush.msk.msra.mxu1 %vm92_vm1, %v1194_v42  ;;  %2428 = vmatpush.msk.msra.mxu3 %vm92_vm1, %v1190_v43  ;;  %v1582_v42 = vsel %vm1580_vm9, %v2573_v35, %v2574_v30  ;;  %v1581_v48 = vsel %vm1580_vm9, %v2574_v30, %v1579_v33 }
  0xfa   :  { %v2969_v46 = vpop.f32.mrf.mxu1 }
  0xfb   :  { %2406 = vmatmul.msk.f32.vlgmr.msra.gmra.mxu0 %vm85_vm3, %v2397_v41 }
  0xfc   :  { %2400 = vmatmul.msk.f32.vlgmr.msra.gmra.mxu2 %vm85_vm3, %v2397_v41  ;;  %2431 = vmatpush.msk.msra.mxu0 %vm92_vm1, %v1189_v44 }
  0xfd   :  { %2425 = vmatpush.msk.msra.mxu2 %vm92_vm1, %v1191_v45 }
  0xfe   :  { %2404 = vmatmul.msk.f32.gmra.mxu3 %vm85_vm3, %v2398_v47  ;;  %2410 = vmatmul.msk.f32.gmra.mxu1 %vm85_vm3, %v2398_v47 }
 0x100   :  { %v2980_v50 = vpop.f32.mrf.mxu0  ;;  %v2982_v51 = vpop.f32.mrf.mxu3 }
 0x103   :  { %v2985_v56 = vpop.f32.mrf.mxu1  ;;  %2407 = vmatmul.msk.f32.gmra.mxu0 %vm85_vm3, %v2398_v47 }
 0x104   :  { %2401 = vmatmul.msk.f32.gmra.mxu2 %vm85_vm3, %v2398_v47 }
 0x106   :  { %2415 = vmatmul.msk.f32.vlgmr.msrb.gmra.mxu3 %vm85_vm3, %v2397_v41  ;;  %2423 = vmatmul.msk.f32.vlgmr.msrb.gmra.mxu1 %vm85_vm3, %v2417_v57 }
 0x107   :  { %v2998_v61 = vpop.f32.mrf.mxu2  ;;  %2442 = vmatpush.msk.msrb.mxu3 %vm92_vm1, %v1388_v58  ;;  %2448 = vmatpush.msk.msrb.mxu1 %vm92_vm1, %v1386_v59 }
 0x108   :  { %v197_v62 = vpop.f32.mrf.mxu3  ;;  %v3002_v63 = vpop.f32.mrf.mxu0 }
 0x10b   :  { %v3008_v7 = vpop.f32.mrf.mxu1  ;;  %2420 = vmatmul.msk.f32.vlgmr.msrb.gmra.mxu0 %vm85_vm3, %v2417_v57 }
 0x10c   :  { %2412 = vmatmul.msk.f32.vlgmr.msrb.gmra.mxu2 %vm85_vm3, %v2397_v41  ;;  %2445 = vmatpush.msk.msrb.mxu0 %vm92_vm1, %v1387_v0  ;;  %v1586_v41 = vsel %vm1580_vm9, %v1579_v33, %v2568_v20 }
 0x10d   :  { %2439 = vmatpush.msk.msrb.mxu2 %vm92_vm1, %v1389_v6 }
 0x10e   :  { %2416 = vmatmul.msk.f32.gmra.mxu3 %vm85_vm3, %v2398_v47  ;;  %2424 = vmatmul.msk.f32.gmra.mxu1 %vm85_vm3, %v2418_v8 }
 0x10f   :  { %v174_v11 = vpop.f32.mrf.mxu2 }
 0x110   :  { %v3019_v13 = vpop.f32.mrf.mxu0 }
 0x111   :  { %v200_v16 = vpop.f32.mrf.mxu3 }
 0x113   :  { %v359_v18 = vpop.f32.mrf.mxu1  ;;  %2421 = vmatmul.msk.f32.gmra.mxu0 %vm85_vm3, %v2418_v8 }
 0x114   :  { %v3025_v5 = vadd.f32 %v359_v18, %v197_v62  ;;  %2413 = vmatmul.msk.f32.gmra.mxu2 %vm85_vm3, %v2398_v47 }
 0x116   :  { %2429 = vmatmul.msk.f32.vlgmr.msra.gmra.mxu3 %vm85_vm3, %v2417_v57  ;;  %2435 = vmatmul.msk.f32.vlgmr.msra.gmra.mxu1 %vm85_vm3, %v2417_v57 }
 0x117   :  { %v177_v3 = vpop.f32.mrf.mxu2  ;;  %2454 = vmatpush.msk.msra.mxu3 %vm92_vm1, %v1390_v1  ;;  %2462 = vmatpush.msk.msra.mxu1 %vm92_vm1, %v1584_v4  ;;  %v1765_v4 = vld [vmem:[%s3548_s2 + $0x8] sm:$0xf] }
 0x118   :  { %v336_v10 = vpop.f32.mrf.mxu0  ;;  %1773 = vperm.xlu2 %2575, %v1765_v4  }
 0x119   :  { %v313_v21 = vpop.f32.mrf.mxu3  ;;  %v3037_v22 = vadd.f32 %v336_v10, %v174_v11 }
 0x11a   :  { %v314_v2 = vadd.f32 %v313_v21, %v2969_v46 }
 0x11b   :  { %v362_v24 = vpop.f32.mrf.mxu1  ;;  %2432 = vmatmul.msk.f32.vlgmr.msra.gmra.mxu0 %vm85_vm3, %v2417_v57 }
 0x11c   :  { %v3045_v25 = vadd.f32 %v362_v24, %v200_v16  ;;  %2426 = vmatmul.msk.f32.vlgmr.msra.gmra.mxu2 %vm85_vm3, %v2417_v57  ;;  %2459 = vmatpush.msk.msra.mxu0 %vm92_vm1, %v1585_v9 }
 0x11d   :  { %2451 = vmatpush.msk.msra.mxu2 %vm92_vm1, %v1385_v23 }
 0x11e   :  { %2430 = vmatmul.msk.f32.gmra.mxu3 %vm85_vm3, %v2418_v8  ;;  %2436 = vmatmul.msk.f32.gmra.mxu1 %vm85_vm3, %v2418_v8 }
 0x11f   :  { %v290_v26 = vpop.f32.mrf.mxu2 }
 0x120   :  { %v291_v28 = vadd.f32 %v290_v26, %v2980_v50  ;;  %v339_v29 = vpop.f32.mrf.mxu0  ;;  %v1583_v50 = vsel %vm1580_vm9, %v3022_v17, %v2573_v35 }
 0x121   :  { %v316_v31 = vpop.f32.mrf.mxu3  ;;  %v3053_v32 = vadd.f32 %v339_v29, %v177_v3 }
 0x122   :  { %v317_v34 = vadd.f32 %v316_v31, %v2982_v51 }
 0x123   :  { %v497_v37 = vpop.f32.mrf.mxu1  ;;  %2433 = vmatmul.msk.f32.gmra.mxu0 %vm85_vm3, %v2418_v8 }
 0x124   :  { %v3063_v40 = vadd.f32 %v497_v37, %v314_v2  ;;  %2427 = vmatmul.msk.f32.gmra.mxu2 %vm85_vm3, %v2418_v8 }
 0x126   :  { %2443 = vmatmul.msk.f32.vlgmr.msrb.gmra.mxu3 %vm85_vm3, %v2437_v38  ;;  %2449 = vmatmul.msk.f32.vlgmr.msrb.gmra.mxu1 %vm85_vm3, %v2437_v38 }
 0x127   :  { %v293_v43 = vpop.f32.mrf.mxu2  ;;  %2474 = vmatpush.msk.msrb.mxu1 %vm92_vm1, %v1586_v41  ;;  %2468 = vmatpush.msk.msrb.mxu3 %vm92_vm1, %v1582_v42 }
 0x128   :  { %v294_v44 = vadd.f32 %v293_v43, %v2998_v61  ;;  %v474_v45 = vpop.f32.mrf.mxu0  ;;  %v2457_v61 = vld [vmem:[%s3547_s1 + $0x80] sm:$0xff] }
 0x129   :  { %v405_v46 = vpop.f32.mrf.mxu3  ;;  %v3075_v47 = vadd.f32 %v474_v45, %v291_v28 }
 0x12a   :  { %v406_v49 = vadd.f32 %v405_v46, %v2985_v56 }
 0x12b   :  { %v500_v51 = vpop.f32.mrf.mxu1  ;;  %2446 = vmatmul.msk.f32.vlgmr.msrb.gmra.mxu0 %vm85_vm3, %v2437_v38 }
 0x12c   :  { %v3087_v53 = vadd.f32 %v500_v51, %v317_v34  ;;  %2440 = vmatmul.msk.f32.vlgmr.msrb.gmra.mxu2 %vm85_vm3, %v2437_v38  ;;  %2471 = vmatpush.msk.msrb.mxu0 %vm92_vm1, %v1581_v48 }
 0x12d   :  { %2465 = vmatpush.msk.msrb.mxu2 %vm92_vm1, %v1583_v50 }
 0x12e   :  { %2444 = vmatmul.msk.f32.gmra.mxu3 %vm85_vm3, %v2438_v52  ;;  %2450 = vmatmul.msk.f32.gmra.mxu1 %vm85_vm3, %v2438_v52 }
 0x12f   :  { %v382_v54 = vpop.f32.mrf.mxu2 }
 0x130   :  { %v383_v55 = vadd.f32 %v382_v54, %v3002_v63  ;;  %v477_v56 = vpop.f32.mrf.mxu0 }
 0x131   :  { %v408_v57 = vpop.f32.mrf.mxu3  ;;  %v601_v58 = vadd.f32 %v477_v56, %v294_v44 }
 0x132   :  { %v409_v59 = vadd.f32 %v408_v57, %v3008_v7 }
 0x133   :  { %v589_v60 = vpop.f32.mrf.mxu1  ;;  %2447 = vmatmul.msk.f32.gmra.mxu0 %vm85_vm3, %v2438_v52 }
 0x134   :  { %v600_v62 = vadd.f32 %v589_v60, %v406_v49  ;;  %2441 = vmatmul.msk.f32.gmra.mxu2 %vm85_vm3, %v2438_v52 }
 0x136   :  { %2455 = vmatmul.msk.f32.vlgmr.msra.gmra.mxu3 %vm85_vm3, %v2437_v38  ;;  %2463 = vmatmul.msk.f32.vlgmr.msra.gmra.mxu1 %vm85_vm3, %v2457_v61 }
 0x137   :  { %v385_v63 = vpop.f32.mrf.mxu2 }
 0x138   :  { %v386_v0 = vadd.f32 %v385_v63, %v3019_v13  ;;  %v566_v6 = vpop.f32.mrf.mxu0 }
 0x139   :  { %v543_v8 = vpop.f32.mrf.mxu3  ;;  %v599_v7 = vadd.f32 %v566_v6, %v383_v55 }
 0x13a   :  { %v598_v12 = vadd.f32 %v543_v8, %v3025_v5 }
 0x13b   :  { %v592_v11 = vpop.f32.mrf.mxu1  ;;  %2460 = vmatmul.msk.f32.vlgmr.msra.gmra.mxu0 %vm85_vm3, %v2457_v61 }
 0x13c   :  { %v606_v16 = vadd.f32 %v592_v11, %v409_v59  ;;  %2452 = vmatmul.msk.f32.vlgmr.msra.gmra.mxu2 %vm85_vm3, %v2437_v38 }
 0x13e   :  { %2456 = vmatmul.msk.f32.gmra.mxu3 %vm85_vm3, %v2438_v52  ;;  %2464 = vmatmul.msk.f32.gmra.mxu1 %vm85_vm3, %v2458_v15 }
 0x13f   :  { %v520_v13 = vpop.f32.mrf.mxu2 }
 0x140   :  { %v597_v17 = vadd.f32 %v520_v13, %v3037_v22  ;;  %v569_v18 = vpop.f32.mrf.mxu0 }
 0x141   :  { %v546_v19 = vpop.f32.mrf.mxu3  ;;  %v605_v5 = vadd.f32 %v569_v18, %v386_v0 }
 0x142   :  { %v604_v1 = vadd.f32 %v546_v19, %v3045_v25 }
 0x143   :  { %v739_v20 = vpop.f32.mrf.mxu1  ;;  %2461 = vmatmul.msk.f32.gmra.mxu0 %vm85_vm3, %v2458_v15 }
 0x144   :  { %v794_v3 = vadd.f32 %v739_v20, %v598_v12  ;;  %2453 = vmatmul.msk.f32.gmra.mxu2 %vm85_vm3, %v2438_v52 }
 0x146   :  { %2469 = vmatmul.msk.f32.vlgmr.msrb.gmra.mxu3 %vm85_vm3, %v2457_v61  ;;  %2475 = vmatmul.msk.f32.vlgmr.msrb.gmra.mxu1 %vm85_vm3, %v2457_v61 }
 0x147   :  { %v523_v10 = vpop.f32.mrf.mxu2 }
 0x148   :  { %v603_v21 = vadd.f32 %v523_v10, %v3053_v32  ;;  %v716_v22 = vpop.f32.mrf.mxu0 }
 0x149   :  { %v693_v9 = vpop.f32.mrf.mxu3  ;;  %v793_v2 = vadd.f32 %v716_v22, %v597_v17 }
 0x14a   :  { %v792_v23 = vadd.f32 %v693_v9, %v3063_v40 }
 0x14b   :  { %v742_v24 = vpop.f32.mrf.mxu1  ;;  %2472 = vmatmul.msk.f32.vlgmr.msrb.gmra.mxu0 %vm85_vm3, %v2457_v61 }
 0x14c   :  { %v800_v25 = vadd.f32 %v742_v24, %v604_v1  ;;  %2466 = vmatmul.msk.f32.vlgmr.msrb.gmra.mxu2 %vm85_vm3, %v2457_v61 }
 0x14e   :  { %2470 = vmatmul.msk.f32.gmra.mxu3 %vm85_vm3, %v2458_v15  ;;  %2476 = vmatmul.msk.f32.gmra.mxu1 %vm85_vm3, %v2458_v15 }
 0x14f   :  { %v670_v26 = vpop.f32.mrf.mxu2 }
 0x150   :  { %v791_v27 = vadd.f32 %v670_v26, %v3075_v47  ;;  %v719_v28 = vpop.f32.mrf.mxu0 }
 0x151   :  { %v696_v29 = vpop.f32.mrf.mxu3  ;;  %v799_v30 = vadd.f32 %v719_v28, %v603_v21 }
 0x152   :  { %v798_v31 = vadd.f32 %v696_v29, %v3087_v53 }
 0x153   :  { %v870_v32 = vpop.f32.mrf.mxu1  ;;  %2473 = vmatmul.msk.f32.gmra.mxu0 %vm85_vm3, %v2458_v15 }
 0x154   :  { %v3130_v33 = vadd.f32 %v870_v32, %v792_v23  ;;  %2467 = vmatmul.msk.f32.gmra.mxu2 %vm85_vm3, %v2458_v15 }
 0x157   :  { %v673_v34 = vpop.f32.mrf.mxu2 }
 0x158   :  { %v797_v35 = vadd.f32 %v673_v34, %v601_v58  ;;  %v847_v36 = vpop.f32.mrf.mxu0 }
 0x159   :  { %v785_v37 = vpop.f32.mrf.mxu3  ;;  %v3133_v38 = vadd.f32 %v847_v36, %v791_v27 }
 0x15a   :  { %v796_v39 = vadd.f32 %v785_v37, %v600_v62 }
 0x15b   :  { %v873_v40 = vpop.f32.mrf.mxu1 }
 0x15c   :  { %v3135_v41 = vadd.f32 %v873_v40, %v798_v31  ;;  %v1799_v31 = vld [vmem:[%s3549_s6] sm:$0xff] }
 0x15d   :  { %v1801_v32 = vunpack.c.l.bf16 %v1799_v31 }
 0x15f   :  { %v762_v42 = vpop.f32.mrf.mxu2  ;;  %1896 = vst [vmem:[#allocation1 + $0x1] ss:$2 sm:$0xff] %v1801_v32 }
 0x160   :  { %v795_v43 = vadd.f32 %v762_v42, %v599_v7  ;;  %v850_v44 = vpop.f32.mrf.mxu0 }
 0x161   :  { %v788_v45 = vpop.f32.mrf.mxu3  ;;  %v3137_v46 = vadd.f32 %v850_v44, %v797_v35 }
 0x162   :  { %v802_v47 = vadd.f32 %v788_v45, %v606_v16 }
 0x163   :  { %v962_v48 = vpop.f32.mrf.mxu1 }
 0x164   :  { %v3139_v49 = vadd.f32 %v962_v48, %v796_v39 }
 0x167   :  { %v765_v50 = vpop.f32.mrf.mxu2 }
 0x168   :  { %v801_v51 = vadd.f32 %v765_v50, %v605_v5  ;;  %v939_v52 = vpop.f32.mrf.mxu0  ;;  %v1804_v50 = vld [vmem:[%s3550_s3] sm:$0xff] }
 0x169   :  { %v916_v53 = vpop.f32.mrf.mxu3  ;;  %v3141_v54 = vadd.f32 %v939_v52, %v795_v43 }
 0x16a   :  { %v971_v55 = vadd.f32 %v916_v53, %v794_v3  ;;  %v3198_v53 = vpop.permute.xlu0 %1768 }
 0x16b   :  { %v965_v56 = vpop.f32.mrf.mxu1 }
 0x16c   :  { %v3143_v57 = vadd.f32 %v965_v56, %v802_v47 }
 0x16f   :  { %v893_v58 = vpop.f32.mrf.mxu2 }
 0x170   :  { %v970_v59 = vadd.f32 %v893_v58, %v793_v2  ;;  %v942_v60 = vpop.f32.mrf.mxu0  ;;  %v1807_v58 = vmul.f32 0.3, %v1804_v50 }
 0x171   :  { %v919_v61 = vpop.f32.mrf.mxu3  ;;  %v3145_v62 = vadd.f32 %v942_v60, %v801_v51  ;;  %v1810_v51 = vld [vmem:[%s3551_s4] sm:$0xff] }
 0x172   :  { %v977_v63 = vadd.f32 %v919_v61, %v800_v25 }
 0x173   :  { %v1112_v0 = vpop.f32.mrf.mxu1 }
 0x174   :  { %v3147_v6 = vadd.f32 %v1112_v0, %v971_v55 }
 0x177   :  { %v896_v8 = vpop.f32.mrf.mxu2 }
 0x178   :  { %v976_v7 = vadd.f32 %v896_v8, %v799_v30  ;;  %v1089_v12 = vpop.f32.mrf.mxu0 }
 0x179   :  { %v1066_v11 = vpop.f32.mrf.mxu3  ;;  %v3149_v15 = vadd.f32 %v1089_v12, %v970_v59  ;;  %v1813_v59 = vsub.f32 1.0, %v1810_v51 }
 0x17a   :  { %v1165_v39 = vadd.f32 %v1066_v11, %v3130_v33  ;;  %v1800_v33 = vld [vmem:[%s3549_s6 + $0x8] sm:$0xf]  ;;  %v3208_v11 = vld [vmem:[%s3552_s5] sm:$0xff] }
 0x17b   :  { %v1115_v16 = vpop.f32.mrf.mxu1  ;;  %v1803_v56 = vunpack.c.l.bf16 %v1800_v33  ;;  %v1796_v32 = vunpack.c.l.bf16 %v3208_v11 }
 0x17c   :  { %v3151_v13 = vadd.f32 %v1115_v16, %v977_v63 }
 0x17d   :  { %1900 = vst [vmem:[#allocation1 + $0x21] ss:$2 sm:$0xff] %v1803_v56 }
 0x17f   :  { %v1043_v17 = vpop.f32.mrf.mxu2 }
 0x180   :  { %v1092_v18 = vpop.f32.mrf.mxu0  ;;  %v1164_v47 = vadd.f32 %v1043_v17, %v3133_v38  ;;  %v1816_v17 = vmul.f32 %v1813_v59, %v1807_v58  ;;  %v1812_v59 = vld [vmem:[%s3551_s4 + $0x10] sm:$0xff] }
 0x181   :  { %v1069_v19 = vpop.f32.mrf.mxu3  ;;  %v3153_v5 = vadd.f32 %v1092_v18, %v976_v7 }
 0x182   :  { %v1171_v38 = vadd.f32 %v1069_v19, %v3135_v41 }
 0x183   :  { %v1262_v1 = vpop.f32.mrf.mxu1 }
 0x184   :  { %v1361_v42 = vadd.f32 %v1262_v1, %v1165_v39 }
 0x187   :  { %v1046_v4 = vpop.f32.mrf.mxu2 }
 0x188   :  { %v1239_v20 = vpop.f32.mrf.mxu0  ;;  %v1170_v41 = vadd.f32 %v1046_v4, %v3137_v46 }
 0x189   :  { %v3155_v3 = vpop.f32.mrf.mxu3  ;;  %v1360_v55 = vadd.f32 %v1239_v20, %v1164_v47  ;;  %v3212_v20 = vpop.permute.xlu2 %1773 }
 0x18a   :  { %v1169_v39 = vadd.f32 %v3155_v3, %v3139_v49 }
 0x18b   :  { %v1265_v10 = vpop.f32.mrf.mxu1 }
 0x18c   :  { %v1367_v0 = vadd.f32 %v1265_v10, %v1171_v38  ;;  %v1802_v10 = vunpack.c.h.bf16 %v1799_v31 }
 0x18e   :  { %1898 = vst [vmem:[#allocation1 + $0x11] ss:$2 sm:$0xff] %v1802_v10 }
 0x18f   :  { %v3157_v21 = vpop.f32.mrf.mxu2 }
 0x190   :  { %v1242_v22 = vpop.f32.mrf.mxu0  ;;  %v1168_v3 = vadd.f32 %v3157_v21, %v3141_v54 }
 0x191   :  { %v3159_v9 = vpop.f32.mrf.mxu3 }
 0x192   :  { %v1175_v54 = vadd.f32 %v3159_v9, %v3143_v57 }
 0x193   :  { %v3161_v2 = vpop.f32.mrf.mxu1 }
 0x194   :  { %v1365_v4 = vadd.f32 %v3161_v2, %v1169_v39 }
 0x197   :  { %v3163_v23 = vpop.f32.mrf.mxu2 }
 0x198   :  { %v3165_v24 = vpop.f32.mrf.mxu0 }
 0x199   :  { %v3167_v25 = vpop.f32.mrf.mxu3  ;;  %v1364_v21 = vadd.f32 %v3165_v24, %v1168_v3 }
 0x19b   :  { %v3169_v26 = vpop.f32.mrf.mxu1 }
 0x19c   :  { %v1371_v57 = vadd.f32 %v3169_v26, %v1175_v54 }
 0x19f   :  { %v3171_v27 = vpop.f32.mrf.mxu2 }
 0x1a0   :  { %v3173_v28 = vpop.f32.mrf.mxu0  ;;  %v1362_v26 = vadd.f32 %v3171_v27, %v3149_v15 }
 0x1a1   :  { %v3175_v29 = vpop.f32.mrf.mxu3 }
 0x1a2   :  { %v1369_v15 = vadd.f32 %v3175_v29, %v3151_v13 }
 0x1a3   :  { %v3177_v30 = vpop.f32.mrf.mxu1 }
 0x1a7   :  { %v3182_v34 = vpop.f32.mrf.mxu2 }
 0x1a8   :  { %v3184_v35 = vpop.f32.mrf.mxu0 }
 0x1a9   :  { %v1458_v36 = vpop.f32.mrf.mxu3 }
 0x1aa   :  { %v1557_v45 = vadd.f32 %v1458_v36, %v1361_v42 }
 0x1ab   :  { %v3186_v37 = vpop.f32.mrf.mxu1 }
 0x1af   :  { %v1435_v40 = vpop.f32.mrf.mxu2 }
 0x1b0   :  { %v3189_v43 = vpop.f32.mrf.mxu0  ;;  %v1556_v60 = vadd.f32 %v1435_v40, %v1360_v55  ;;  %v1366_v40 = vadd.f32 %v1242_v22, %v1170_v41  ;;  %v2598_v22 = vmov 0.0  }
 0x1b1   :  { %v1461_v44 = vpop.f32.mrf.mxu3 }
 0x1b2   :  { %v1563_v16 = vadd.f32 %v1461_v44, %v1367_v0 }
 0x1b3   :  { %v1654_v48 = vpop.f32.mrf.mxu1 }
 0x1b4   :  { %v1753_v52 = vadd.f32 %v1654_v48, %v1557_v45 }
 0x1b6   :  { %v1777_v61 = vadd.f32 %v3198_v53, %v1753_v52 }
 0x1b7   :  { %v1438_v63 = vpop.f32.mrf.mxu2 }
 0x1b8   :  { %v1631_v8 = vpop.f32.mrf.mxu0  ;;  %v1825_v19 = vrot.slane %v1777_v61, 4  ;;  %v1562_v45 = vadd.f32 %v1438_v63, %v1366_v40 }
 0x1b9   :  { %v1550_v7 = vpop.f32.mrf.mxu3  ;;  %v1752_v12 = vadd.f32 %v1631_v8, %v1556_v60 }
 0x1ba   :  { %v1561_v55 = vadd.f32 %v1550_v7, %v1365_v4  ;;  %v1363_v7 = vadd.f32 %v3167_v25, %v3147_v6  ;;  %v1174_v6 = vadd.f32 %v3163_v23, %v3145_v62  ;;  %v1902_v23 = vld.sshfl [vmem:[#allocation1 + $0x8] sm:$0xff pattern:$0x75316420] }
 0x1bb   :  { %v1776_v18 = vadd.f32 %v3198_v53, %v1752_v12  ;;  %v1657_v1 = vpop.f32.mrf.mxu1 }
 0x1bc   :  { %v1759_v36 = vadd.f32 %v1657_v1, %v1563_v16  ;;  %v1815_v16 = vsub.f32 1.0, %v1812_v59  ;;  %v1559_v9 = vadd.f32 %v3177_v30, %v1363_v7  ;;  %v1901_v59 = vld.sshfl [vmem:[#allocation1] sm:$0xff pattern:$0x75316420] }
 0x1bd   :  { %v1829_v42 = vsel %vm1828_vm10, %v1776_v18, %v1825_v19 }
 0x1be   :  { %v1835_v44 = vadd.f32 %v1829_v42, %v1816_v17  ;;  %v1783_v46 = vadd.f32 %v3212_v20, %v1759_v36 }
 0x1bf   :  { %v1527_v47 = vpop.f32.mrf.mxu2 }
 0x1c0   :  { %v2477_v48 = vadd.f32 -0.5, %v1835_v44  ;;  %v1850_v50 = vmul.f32 %v1835_v44, %v1796_v32  ;;  %v1789_v31 = vmax.f32 %v1783_v46, 0.0  ;;  %v1634_v51 = vpop.f32.mrf.mxu0  ;;  %v1560_v17 = vadd.f32 %v1527_v47, %v1364_v21 }
 0x1c1   :  { %v1553_v52 = vpop.f32.mrf.mxu3  ;;  %v1758_v33 = vadd.f32 %v1634_v51, %v1562_v45  ;;  %v1558_v51 = vadd.f32 %v3184_v35, %v1362_v26  ;;  %v1368_v35 = vadd.f32 %v3182_v34, %v3153_v5  ;;  %v1797_v5 = vunpack.c.h.bf16 %v3208_v11 }
 0x1c2   :  { %vm1841_vm11 = vcmp.gt.f32.partialorder %v2477_v48, 0.0  ;;  %1856 = vst [vmem:[%s3553_s7] sm:$0xff] %v1850_v50  ;;  %v1869_v49 = vrot.slane %v1789_v31, 4  ;;  %v1567_v39 = vadd.f32 %v1553_v52, %v1371_v57 }
 0x1c3   :  { %v2480_v2 = vsel %vm1841_vm11, 1.0, %v2598_v22  ;;  %v1782_v56 = vadd.f32 %v3212_v20, %v1758_v33  ;;  %v1746_v38 = vpop.f32.mrf.mxu1 }
 0x1c4   :  { %v3233_v60 = vmul.f32 %v2480_v2, %v1796_v32  ;;  %v1881_v63 = vadd.f32 %v1869_v49, %v1777_v61  ;;  %v1757_v0 = vadd.f32 %v1746_v38, %v1561_v55  ;;  %v1795_v32 = vld [vmem:[%s3552_s5 + $0x8] sm:$0xf]  ;;  %v1565_v55 = vadd.f32 %v3186_v37, %v1369_v15  ;;  %v1905_v15 = vld.sshfl [vmem:[#allocation1 + $0x20] sm:$0xff pattern:$0x75316420] }
 0x1c5   :  { %v1788_v8 = vmax.f32 %v1782_v56, 0.0  ;;  %v1798_v27 = vunpack.c.l.bf16 %v1795_v32 }
 0x1c6   :  { %1859 = vst [vmem:[%s3554_s8] sm:$0xff] %v3233_v60  ;;  %2577 = vtanh.f32 %v1881_v63  ;;  %v1781_v41 = vadd.f32 %v3198_v53, %v1757_v0 }
 0x1c7   :  { %v1868_v61 = vrot.slane %v1788_v8, 4  ;;  %v1530_v19 = vpop.f32.mrf.mxu2 }
 0x1c8   :  { %v1723_v24 = vpop.f32.mrf.mxu0  ;;  %v1827_v42 = vrot.slane %v1781_v41, 4 }
 0x1c9   :  { %v1806_v58 = vld [vmem:[%s3550_s3 + $0x10] sm:$0xff]  ;;  %v1880_v25 = vadd.f32 %v1868_v61, %v1776_v18  ;;  %v1700_v1 = vpop.f32.mrf.mxu3  ;;  %v1756_v10 = vadd.f32 %v1723_v24, %v1560_v17  ;;  %v1805_v36 = vld [vmem:[%s3550_s3 + $0x8] sm:$0xff]  ;;  %v1370_v18 = vadd.f32 %v3173_v28, %v1174_v6 }
 0x1ca   :  { %v1809_v12 = vmul.f32 0.3, %v1806_v58  ;;  %v1755_v30 = vadd.f32 %v1700_v1, %v1559_v9  ;;  %v1808_v47 = vmul.f32 0.3, %v1805_v36 }
 0x1cb   :  { %2579 = vtanh.f32 %v1880_v25  ;;  %v3262_v44 = vadd.f32 %v3198_v53, %v1756_v10  ;;  %v1749_v46 = vpop.f32.mrf.mxu1  ;;  %v1566_v49 = vadd.f32 %v1530_v19, %v1370_v18  ;;  %v1564_v25 = vadd.f32 %v3189_v43, %v1368_v35 }
 0x1cc   :  { %v1818_v40 = vmul.f32 %v1815_v16, %v1809_v12  ;;  %v2578_v4 = vpop.eup %2577  ;;  %v1763_v45 = vadd.f32 %v1749_v46, %v1567_v39  ;;  %v1779_v48 = vadd.f32 %v3198_v53, %v1755_v30 }
 0x1cd   :  { %v1811_v62 = vld [vmem:[%s3551_s4 + $0x8] sm:$0xff]  ;;  %v1831_v50 = vsel %vm1828_vm10, %v3262_v44, %v1827_v42  ;;  %v3269_v28 = vmul.f32 %v2578_v4, %v1902_v23 }
 0x1ce   :  { %v1814_v31 = vsub.f32 1.0, %v1811_v62  ;;  %v1837_v52 = vadd.f32 %v1831_v50, %v1818_v40  ;;  %v1787_v33 = vadd.f32 %v3212_v20, %v1763_v45  ;;  %v1826_v0 = vrot.slane %v1779_v48, 4  ;;  %v1906_v62 = vld.sshfl [vmem:[#allocation1 + $0x28] sm:$0xff pattern:$0x75316420] }
 0x1cf   :  { %v1677_v13 = vpop.f32.mrf.mxu2  ;;  %v3275_v29 = vrot.slane %v3269_v28, 4  ;;  %1926 = vst.sshfl [vmem:[#allocation1 + $0x8] sm:$0xff pattern:$0x75316420] %v3269_v28 }
 0x1d0   :  { %v2479_v3 = vadd.f32 -0.5, %v1837_v52  ;;  %v1852_v2 = vmul.f32 %v1837_v52, %v1798_v27  ;;  %v1793_v56 = vmax.f32 %v1787_v33, 0.0  ;;  %v1754_v38 = vadd.f32 %v1677_v13, %v1558_v51  ;;  %v1726_v58 = vpop.f32.mrf.mxu0  ;;  %v1904_v45 = vld.sshfl [vmem:[#allocation1 + $0x18] sm:$0xff pattern:$0x75316420] }
 0x1d1   :  { %v2580_v63 = vpop.eup %2579  ;;  %v1817_v54 = vmul.f32 %v1814_v31, %v1808_v47  ;;  %v1703_v37 = vpop.f32.mrf.mxu3  ;;  %v1762_v21 = vadd.f32 %v1726_v58, %v1566_v49  ;;  %2125 = vrot.lane.b32.xlu2 %v3275_v29, %s2593_s26  ;;  %v1903_v51 = vld.sshfl [vmem:[#allocation1 + $0x10] sm:$0xff pattern:$0x75316420] }
 0x1d2   :  { %vm1843_vm12 = vcmp.gt.f32.partialorder %v2479_v3, 0.0  ;;  %1858 = vst [vmem:[%s3553_s7 + $0x10] sm:$0xff] %v1852_v2  ;;  %v1873_v8 = vrot.slane %v1793_v56, 4  ;;  %v1778_v7 = vadd.f32 %v3198_v53, %v1754_v38  ;;  %v1761_v12 = vadd.f32 %v1703_v37, %v1565_v55 }
 0x1d3   :  { %v2482_v16 = vsel %vm1843_vm12, 1.0, %v2598_v22  ;;  %v1786_v34 = vadd.f32 %v3212_v20, %v1762_v21  ;;  %v3289_v17 = vmul.f32 %v2580_v63, %v1901_v59 }
 0x1d4   :  { %v3291_v61 = vmul.f32 %v2482_v16, %v1798_v27  ;;  %v1885_v19 = vadd.f32 %v1873_v8, %v1781_v41  ;;  %v1830_v57 = vsel %vm1828_vm10, %v1778_v7, %v1826_v0  ;;  %v1785_v9 = vadd.f32 %v3212_v20, %v1761_v12 }
 0x1d5   :  { %v1836_v24 = vadd.f32 %v1830_v57, %v1817_v54  ;;  %v1792_v6 = vmax.f32 %v1786_v34, 0.0  ;;  %v2111_v53 = vrot.slane %v3289_v17, 4  ;;  %1925 = vst.sshfl [vmem:[#allocation1] sm:$0xff pattern:$0x75316420] %v3289_v17 }
 0x1d6   :  { %1861 = vst [vmem:[%s3554_s8 + $0x10] sm:$0xff] %v3291_v61  ;;  %2581 = vtanh.f32 %v1885_v19  ;;  %v1791_v11 = vmax.f32 %v1785_v9, 0.0 }
 0x1d7   :  { %v2478_v41 = vadd.f32 -0.5, %v1836_v24  ;;  %v1851_v1 = vmul.f32 %v1836_v24, %v1797_v5  ;;  %v1872_v10 = vrot.slane %v1792_v6, 4  ;;  %v1680_v32 = vpop.f32.mrf.mxu2  ;;  %2123 = vrot.lane.b32.xlu1 %v2111_v53, %s2593_s26  ;;  %1946 = vst [vmem:[#allocation1] ss:$2 sm:$0xff] %v3233_v60 }
 0x1d8   :  { %v1871_v36 = vrot.slane %v1791_v11, 4  ;;  %v1760_v26 = vadd.f32 %v1680_v32, %v1564_v25 }
 0x1d9   :  { %vm1842_vm13 = vcmp.gt.f32.partialorder %v2478_v41, 0.0  ;;  %1857 = vst [vmem:[%s3553_s7 + $0x8] sm:$0xff] %v1851_v1  ;;  %v1884_v43 = vadd.f32 %v1872_v10, %v3262_v44  ;;  %2167 = vrot.lane.b32.xlu2 %v3275_v29, %s2595_s28 }
 0x1da   :  { %v2481_v39 = vsel %vm1842_vm13, 1.0, %v2598_v22  ;;  %v1883_v30 = vadd.f32 %v1871_v36, %v1779_v48  ;;  %v1784_v40 = vadd.f32 %v3212_v20, %v1760_v26 }
 0x1db   :  { %v3312_v23 = vmul.f32 %v2481_v39, %v1797_v5  ;;  %2583 = vtanh.f32 %v1884_v43 }
 0x1dc   :  { %v2582_v18 = vpop.eup %2581  ;;  %2585 = vtanh.f32 %v1883_v30  ;;  %v1790_v42 = vmax.f32 %v1784_v40, 0.0  ;;  %v1932_v46 = vld [vmem:[#allocation1 + $0x1] ss:$2 sm:$0xff] }
 0x1dd   :  { %1860 = vst [vmem:[%s3554_s8 + $0x8] sm:$0xff] %v3312_v23  ;;  %v3318_v44 = vmul.f32 %v2582_v18, %v1906_v62 }
 0x1de   :  { %v1870_v4 = vrot.slane %v1790_v42, 4  ;;  %v1951_v22 = vld.sshfl [vmem:[#allocation1] sm:$0xff pattern:$0x75316420]  ;;  %1940 = vst [vmem:[%s3555_s9] sm:$0xff] %v1932_v46 }
 0x1df   :  { %v1952_v20 = vld.sshfl [vmem:[#allocation1 + $0x8] sm:$0xff pattern:$0x75316420]  ;;  %2165 = vrot.lane.b32.xlu1 %v2111_v53, %s2595_s28  ;;  %1930 = vst.sshfl [vmem:[#allocation1 + $0x28] sm:$0xff pattern:$0x75316420] %v3318_v44 }
 0x1e0   :  { %v1882_v27 = vadd.f32 %v1870_v4, %v1778_v7  ;;  %1999 = vst [vmem:[#allocation1] ss:$2 sm:$0xff] %v3233_v60  ;;  %v2116_v2 = vrot.slane %v3318_v44, 4 }
 0x1e1   :  { %v2584_v47 = vpop.eup %2583  ;;  %2209 = vrot.lane.b32.xlu2 %v3275_v29, %s2596_s14 }
 0x1e2   :  { %v2586_v48 = vpop.eup %2585  ;;  %2587 = vtanh.f32 %v1882_v27  ;;  %v3328_v50 = vmul.f32 %v2584_v47, %v1905_v15 }
 0x1e3   :  { %v3330_v31 = vmul.f32 %v2586_v48, %v1904_v45 }
 0x1e4   :  { %1929 = vst.sshfl [vmem:[#allocation1 + $0x20] sm:$0xff pattern:$0x75316420] %v3328_v50  ;;  %v2115_v0 = vrot.slane %v3328_v50, 4 }
 0x1e5   :  { %1928 = vst.sshfl [vmem:[#allocation1 + $0x18] sm:$0xff pattern:$0x75316420] %v3330_v31  ;;  %v2114_v58 = vrot.slane %v3330_v31, 4 }
 0x1e6   :  { %1950 = vst [vmem:[#allocation1 + $0x20] ss:$2 sm:$0xff] %v3291_v61 }
 0x1e7   :  { %v2005_v52 = vld.sshfl [vmem:[#allocation1 + $0x8] sm:$0xff pattern:$0x75316420]  ;;  %2207 = vrot.lane.b32.xlu1 %v2111_v53, %s2596_s14  ;;  %v2004_v33 = vld.sshfl [vmem:[#allocation1] sm:$0xff pattern:$0x75316420] }
 0x1e8   :  { %v2588_v55 = vpop.eup %2587  ;;  %2018 = vrot.lane.b32.xlu0 %v2005_v52, %s2595_s28  ;;  %2052 = vst [vmem:[#allocation1] ss:$2 sm:$0xff] %v3233_v60 }
 0x1e9   :  { %1965 = vrot.lane.b32.xlu2 %v1952_v20, %s2593_s26  ;;  %v3339_v49 = vmul.f32 %v2588_v55, %v1903_v51 }
 0x1eb   :  { %1927 = vst.sshfl [vmem:[#allocation1 + $0x10] sm:$0xff pattern:$0x75316420] %v3339_v49  ;;  %v1936_v13 = vld [vmem:[#allocation1 + $0x21] ss:$2 sm:$0xff]  ;;  %v2113_v21 = vrot.slane %v3339_v49, 4 }
 0x1ec   :  { %1948 = vst [vmem:[#allocation1 + $0x10] ss:$2 sm:$0xff] %v3312_v23 }
 0x1ed   :  { %v1956_v29 = vld.sshfl [vmem:[#allocation1 + $0x28] sm:$0xff pattern:$0x75316420]  ;;  %v1955_v3 = vld.sshfl [vmem:[#allocation1 + $0x20] sm:$0xff pattern:$0x75316420] }
 0x1ee   :  { %2003 = vst [vmem:[#allocation1 + $0x20] ss:$2 sm:$0xff] %v3291_v61 }
 0x1ef   :  { %1963 = vrot.lane.b32.xlu1 %v1951_v22, %s2593_s26  ;;  %1942 = vst [vmem:[%s3555_s9 + $0x10] sm:$0xff] %v1936_v13  ;;  %v2057_v8 = vld.sshfl [vmem:[#allocation1] sm:$0xff pattern:$0x75316420] }
 0x1f0   :  { %2133 = vrot.lane.b32.xlu0 %v2116_v2, %s2593_s26  ;;  %v2058_v7 = vld.sshfl [vmem:[#allocation1 + $0x8] sm:$0xff pattern:$0x75316420] }
 0x1f1   :  { %2016 = vrot.lane.b32.xlu2 %v2004_v33, %s2595_s28 }
 0x1f2   :  { %v1934_v59 = vld [vmem:[#allocation1 + $0x11] ss:$2 sm:$0xff] }
 0x1f3   :  { %v1954_v56 = vld.sshfl [vmem:[#allocation1 + $0x18] sm:$0xff pattern:$0x75316420]  ;;  %v1953_v38 = vld.sshfl [vmem:[#allocation1 + $0x10] sm:$0xff pattern:$0x75316420] }
 0x1f4   :  { %2001 = vst [vmem:[#allocation1 + $0x10] ss:$2 sm:$0xff] %v3312_v23 }
 0x1f5   :  { %v2009_v63 = vld.sshfl [vmem:[#allocation1 + $0x28] sm:$0xff pattern:$0x75316420]  ;;  %v2008_v35 = vld.sshfl [vmem:[#allocation1 + $0x20] sm:$0xff pattern:$0x75316420] }
 0x1f6   :  { %2056 = vst [vmem:[#allocation1 + $0x20] ss:$2 sm:$0xff] %v3291_v61 }
 0x1f7   :  { %2129 = vrot.lane.b32.xlu1 %v2114_v58, %s2593_s26  ;;  %1941 = vst [vmem:[%s3555_s9 + $0x8] sm:$0xff] %v1934_v59 }
 0x1f8   :  { %2175 = vrot.lane.b32.xlu0 %v2116_v2, %s2595_s28 }
 0x1f9   :  { %2131 = vrot.lane.b32.xlu2 %v2115_v0, %s2593_s26 }
 0x1fb   :  { %v2007_v54 = vld.sshfl [vmem:[#allocation1 + $0x18] sm:$0xff pattern:$0x75316420]  ;;  %v2006_v37 = vld.sshfl [vmem:[#allocation1 + $0x10] sm:$0xff pattern:$0x75316420] }
 0x1fc   :  { %2054 = vst [vmem:[#allocation1 + $0x10] ss:$2 sm:$0xff] %v3312_v23 }
 0x1fd   :  { %v2061_v34 = vld.sshfl [vmem:[#allocation1 + $0x20] sm:$0xff pattern:$0x75316420]  ;;  %v2062_v57 = vld.sshfl [vmem:[#allocation1 + $0x28] sm:$0xff pattern:$0x75316420] }
 0x1ff   :  { %2171 = vrot.lane.b32.xlu1 %v2114_v58, %s2595_s28 }
 0x200   :  { %2127 = vrot.lane.b32.xlu0 %v2113_v21, %s2593_s26 }
 0x201   :  { %2173 = vrot.lane.b32.xlu2 %v2115_v0, %s2595_s28 }
 0x203   :  { %v2060_v12 = vld.sshfl [vmem:[#allocation1 + $0x18] sm:$0xff pattern:$0x75316420]  ;;  %v2059_v5 = vld.sshfl [vmem:[#allocation1 + $0x10] sm:$0xff pattern:$0x75316420] }
 0x207   :  { %2213 = vrot.lane.b32.xlu1 %v2114_v58, %s2596_s14 }
 0x208   :  { %2169 = vrot.lane.b32.xlu0 %v2113_v21, %s2595_s28 }
 0x209   :  { %2069 = vrot.lane.b32.xlu2 %v2057_v8, %s2596_s14 }
 0x20f   :  { %1973 = vrot.lane.b32.xlu1 %v1956_v29, %s2593_s26 }
 0x210   :  { %2211 = vrot.lane.b32.xlu0 %v2113_v21, %s2596_s14 }
 0x211   :  { %1969 = vrot.lane.b32.xlu2 %v1954_v56, %s2593_s26 }
 0x217   :  { %1967 = vrot.lane.b32.xlu1 %v1953_v38, %s2593_s26 }
 0x218   :  { %1971 = vrot.lane.b32.xlu0 %v1955_v3, %s2593_s26 }
 0x219   :  { %2022 = vrot.lane.b32.xlu2 %v2007_v54, %s2595_s28 }
 0x21f   :  { %2026 = vrot.lane.b32.xlu1 %v2009_v63, %s2595_s28 }
 0x220   :  { %2071 = vrot.lane.b32.xlu0 %v2058_v7, %s2596_s14 }
 0x221   :  { %2075 = vrot.lane.b32.xlu2 %v2060_v12, %s2596_s14 }
 0x227   :  { %2020 = vrot.lane.b32.xlu1 %v2006_v37, %s2595_s28 }
 0x228   :  { %2024 = vrot.lane.b32.xlu0 %v2008_v35, %s2595_s28 }
 0x229   :  { %2215 = vrot.lane.b32.xlu2 %v2115_v0, %s2596_s14 }
 0x22b   :  { %v2126_v16 = vpop.permute.xlu2 %2125 }
 0x22f   :  { %2073 = vrot.lane.b32.xlu1 %v2059_v5, %s2596_s14 }
 0x230   :  { %2077 = vrot.lane.b32.xlu0 %v2061_v34, %s2596_s14 }
 0x233   :  { %v2168_v19 = vpop.permute.xlu2 %2167 }
 0x237   :  { %2079 = vrot.lane.b32.xlu1 %v2062_v57, %s2596_s14 }
 0x238   :  { %2217 = vrot.lane.b32.xlu0 %v2116_v2, %s2596_s14 }
 0x23b   :  { %v3385_v9 = vpop.permute.xlu2 %2209 }
 0x243   :  { %v3387_v24 = vpop.permute.xlu2 %1965 }
 0x249   :  { %v2124_v6 = vpop.permute.xlu1 %2123 }
 0x24a   :  { %v2139_v11 = vsel %vm992_vm6, %v2124_v6, %v2126_v16 }
 0x24b   :  { %v3389_v53 = vpop.permute.xlu2 %2016  ;;  %v2147_v10 = vrot.slane %v2139_v11, 4 }
 0x24d   :  { %v2159_v36 = vadd.f32 %v2147_v10, %v3289_v17 }
 0x251   :  { %v2166_v25 = vpop.permute.xlu1 %2165 }
 0x252   :  { %v2181_v1 = vsel %vm1384_vm8, %v2166_v25, %v2168_v19 }
 0x253   :  { %v2132_v41 = vpop.permute.xlu2 %2131  ;;  %v2189_v32 = vrot.slane %v2181_v1, 4 }
 0x255   :  { %v2201_v30 = vadd.f32 %v2189_v32, %v2159_v36 }
 0x259   :  { %v3396_v26 = vpop.permute.xlu1 %2207 }
 0x25a   :  { %v3398_v43 = vpop.permute.xlu0 %2018  ;;  %v2223_v39 = vsel %vm1580_vm9, %v3396_v26, %v3385_v9 }
 0x25b   :  { %v3408_v40 = vsel %vm1384_vm8, %v3389_v53, %v3398_v43  ;;  %v2231_v62 = vrot.slane %v2223_v39, 4  ;;  %v2174_v18 = vpop.permute.xlu2 %2173 }
 0x25d   :  { %v2243_v42 = vadd.f32 %v2231_v62, %v2201_v30 }
 0x25f   :  { %v2249_v17 = vmul.f32 0.25, %v2243_v42 }
 0x261   :  { %2261 = vst.sshfl [vmem:[#allocation1] sm:$0xff pattern:$0x75316420] %v2249_v17  ;;  %v3410_v46 = vpop.permute.xlu1 %1963 }
 0x262   :  { %v2134_v4 = vpop.permute.xlu0 %2133 }
 0x263   :  { %v2135_v22 = vsel %vm992_vm6, %v2132_v41, %v2134_v4  ;;  %v2140_v20 = vsel %vm992_vm6, %v2134_v4, %v2124_v6  ;;  %v3416_v15 = vpop.permute.xlu2 %2069 }
 0x264   :  { %v2151_v27 = vrot.slane %v2135_v22, 4  ;;  %v2152_v45 = vrot.slane %v2140_v20, 4 }
 0x266   :  { %v2163_v55 = vadd.f32 %v2151_v27, %v3328_v50  ;;  %v2164_v13 = vadd.f32 %v2152_v45, %v3318_v44 }
 0x269   :  { %v2130_v47 = vpop.permute.xlu1 %2129 }
 0x26a   :  { %v2176_v48 = vpop.permute.xlu0 %2175  ;;  %v2136_v21 = vsel %vm992_vm6, %v2130_v47, %v2132_v41 }
 0x26b   :  { %v2177_v51 = vsel %vm1384_vm8, %v2174_v18, %v2176_v48  ;;  %v2182_v52 = vsel %vm1384_vm8, %v2176_v48, %v2166_v25  ;;  %v3422_v33 = vpop.permute.xlu2 %1969  ;;  %v2150_v57 = vrot.slane %v2136_v21, 4 }
 0x26c   :  { %v2193_v29 = vrot.slane %v2177_v51, 4  ;;  %v2194_v3 = vrot.slane %v2182_v52, 4 }
 0x26d   :  { %v2162_v41 = vadd.f32 %v2150_v57, %v3330_v31 }
 0x26e   :  { %v3426_v2 = vadd.f32 %v2193_v29, %v2163_v55  ;;  %v3428_v56 = vadd.f32 %v2194_v3, %v2164_v13 }
 0x271   :  { %v2172_v38 = vpop.permute.xlu1 %2171 }
 0x272   :  { %v2128_v58 = vpop.permute.xlu0 %2127  ;;  %v2178_v5 = vsel %vm1384_vm8, %v2172_v38, %v2174_v18 }
 0x273   :  { %v3430_v59 = vpop.permute.xlu2 %2022  ;;  %v2138_v63 = vsel %vm992_vm6, %v2126_v16, %v2128_v58  ;;  %v2137_v50 = vsel %vm992_vm6, %v2128_v58, %v2130_v47  ;;  %v2192_v25 = vrot.slane %v2178_v5, 4  ;;  %v1979_v58 = vsel %vm992_vm6, %v3410_v46, %v3387_v24 }
 0x274   :  { %v2148_v35 = vrot.slane %v2138_v63, 4  ;;  %v2149_v16 = vrot.slane %v2137_v50, 4 }
 0x276   :  { %v2160_v8 = vadd.f32 %v2148_v35, %v3269_v28  ;;  %v2161_v11 = vadd.f32 %v2149_v16, %v3339_v49  ;;  %v2204_v49 = vadd.f32 %v2192_v25, %v2162_v41 }
 0x279   :  { %v2214_v0 = vpop.permute.xlu1 %2213 }
 0x27a   :  { %v2170_v54 = vpop.permute.xlu0 %2169 }
 0x27b   :  { %v2180_v44 = vsel %vm1384_vm8, %v2168_v19, %v2170_v54  ;;  %v3438_v37 = vpop.permute.xlu2 %2075  ;;  %v2179_v12 = vsel %vm1384_vm8, %v2170_v54, %v2172_v38 }
 0x27c   :  { %v2190_v7 = vrot.slane %v2180_v44, 4  ;;  %v2191_v6 = vrot.slane %v2179_v12, 4 }
 0x27e   :  { %v2202_v34 = vadd.f32 %v2190_v7, %v2160_v8  ;;  %v2203_v36 = vadd.f32 %v2191_v6, %v2161_v11 }
 0x281   :  { %v1974_v19 = vpop.permute.xlu1 %1973 }
 0x282   :  { %v2212_v1 = vpop.permute.xlu0 %2211  ;;  %v1980_v52 = vsel %vm992_vm6, %v1974_v19, %v3410_v46 }
 0x283   :  { %v2221_v28 = vsel %vm1580_vm9, %v2212_v1, %v2214_v0  ;;  %v2222_v10 = vsel %vm1580_vm9, %v3385_v9, %v2212_v1  ;;  %v3454_v32 = vpop.permute.xlu2 %2215  ;;  %v1989_v3 = vrot.slane %v1980_v52, 4 }
 0x284   :  { %v2232_v39 = vrot.slane %v2222_v10, 4  ;;  %v2233_v30 = vrot.slane %v2221_v28, 4  ;;  %v2220_v62 = vsel %vm1580_vm9, %v2214_v0, %v3454_v32 }
 0x285   :  { %v2234_v18 = vrot.slane %v2220_v62, 4 }
 0x286   :  { %v2244_v42 = vadd.f32 %v2232_v39, %v2202_v34  ;;  %v2245_v31 = vadd.f32 %v2233_v30, %v2203_v36 }
 0x287   :  { %v2246_v17 = vadd.f32 %v2234_v18, %v2204_v49 }
 0x288   :  { %v2250_v4 = vmul.f32 0.25, %v2244_v42  ;;  %v2251_v22 = vmul.f32 0.25, %v2245_v31 }
 0x289   :  { %v2252_v20 = vmul.f32 0.25, %v2246_v17  ;;  %v1968_v27 = vpop.permute.xlu1 %1967 }
 0x28a   :  { %2262 = vst.sshfl [vmem:[#allocation1 + $0x8] sm:$0xff pattern:$0x75316420] %v2250_v4  ;;  %v1972_v9 = vpop.permute.xlu0 %1971  ;;  %v1978_v48 = vsel %vm992_vm6, %v3387_v24, %v1968_v27  ;;  %v1977_v5 = vsel %vm992_vm6, %v1968_v27, %v3422_v33 }
 0x28b   :  { %2263 = vst.sshfl [vmem:[#allocation1 + $0x10] sm:$0xff pattern:$0x75316420] %v2251_v22  ;;  %v1975_v13 = vsel %vm992_vm6, %v1972_v9, %v1974_v19  ;;  %v1987_v29 = vrot.slane %v1978_v48, 4  ;;  %v1976_v35 = vsel %vm992_vm6, %v3422_v33, %v1972_v9 }
 0x28c   :  { %2264 = vst.sshfl [vmem:[#allocation1 + $0x18] sm:$0xff pattern:$0x75316420] %v2252_v20  ;;  %v1992_v63 = vsel %vm1828_vm10, %v1975_v13, %v1989_v3  ;;  %v1988_v7 = vrot.slane %v1976_v35, 4 }
 0x28d   :  { %v1990_v0 = vsel %vm1828_vm10, %v1979_v58, %v1987_v29  ;;  %v1998_v21 = vadd.f32 %v1992_v63, %v3291_v61 }
 0x28e   :  { %v1996_v12 = vadd.f32 %v1990_v0, %v3233_v60  ;;  %v1991_v25 = vsel %vm1828_vm10, %v1977_v5, %v1988_v7 }
 0x28f   :  { %v1997_v33 = vadd.f32 %v1991_v25, %v3312_v23 }
 0x291   :  { %v2268_v45 = vld [vmem:[#allocation1 + $0x1] ss:$2 sm:$0xff]  ;;  %v2027_v47 = vpop.permute.xlu1 %2026 }
 0x292   :  { %2276 = vst [vmem:[%s3556_s11] sm:$0xff] %v2268_v45  ;;  %v2072_v51 = vpop.permute.xlu0 %2071  ;;  %v2033_v38 = vsel %vm1384_vm8, %v2027_v47, %v3389_v53 }
 0x293   :  { %v2270_v55 = vld [vmem:[#allocation1 + $0x11] ss:$2 sm:$0xff]  ;;  %v2042_v50 = vrot.slane %v2033_v38, 4  ;;  %v2085_v28 = vsel %vm1580_vm9, %v3416_v15, %v2072_v51 }
 0x294   :  { %2277 = vst [vmem:[%s3556_s11 + $0x8] sm:$0xff] %v2270_v55 }
 0x299   :  { %v2021_v54 = vpop.permute.xlu1 %2020 }
 0x29a   :  { %v2025_v44 = vpop.permute.xlu0 %2024  ;;  %v2031_v53 = vsel %vm1384_vm8, %v3398_v43, %v2021_v54  ;;  %v2030_v6 = vsel %vm1384_vm8, %v2021_v54, %v3430_v59 }
 0x29b   :  { %v2028_v24 = vsel %vm1384_vm8, %v2025_v44, %v2027_v47  ;;  %v2029_v46 = vsel %vm1384_vm8, %v3430_v59, %v2025_v44  ;;  %v2040_v8 = vrot.slane %v2031_v53, 4 }
 0x29c   :  { %v2045_v16 = vsel %vm1828_vm10, %v2028_v24, %v2042_v50  ;;  %v2041_v34 = vrot.slane %v2029_v46, 4 }
 0x29d   :  { %v2051_v43 = vadd.f32 %v2045_v16, %v1998_v21  ;;  %v2043_v61 = vsel %vm1828_vm10, %v3408_v40, %v2040_v8 }
 0x29e   :  { %v2049_v57 = vadd.f32 %v2043_v61, %v1996_v12  ;;  %v2044_v60 = vsel %vm1828_vm10, %v2030_v6, %v2041_v34 }
 0x29f   :  { %v2050_v36 = vadd.f32 %v2044_v60, %v1997_v33 }
 0x2a1   :  { %v2074_v19 = vpop.permute.xlu1 %2073 }
 0x2a2   :  { %v2078_v11 = vpop.permute.xlu0 %2077  ;;  %v2084_v1 = vsel %vm1580_vm9, %v2072_v51, %v2074_v19  ;;  %v2083_v41 = vsel %vm1580_vm9, %v2074_v19, %v3438_v37 }
 0x2a3   :  { %v2082_v40 = vsel %vm1580_vm9, %v3438_v37, %v2078_v11  ;;  %v2093_v59 = vrot.slane %v2084_v1, 4 }
 0x2a4   :  { %v2094_v10 = vrot.slane %v2082_v40, 4 }
 0x2a5   :  { %v2096_v39 = vsel %vm1828_vm10, %v2085_v28, %v2093_v59 }
 0x2a6   :  { %v2097_v30 = vsel %vm1828_vm10, %v2083_v41, %v2094_v10  ;;  %v2102_v23 = vadd.f32 %v2096_v39, %v2049_v57 }
 0x2a7   :  { %v2103_v62 = vadd.f32 %v2097_v30, %v2050_v36 }
 0x2a8   :  { %v2105_v49 = vmul.f32 0.25, %v2102_v23 }
 0x2a9   :  { %v2106_v18 = vmul.f32 0.25, %v2103_v62  ;;  %v2080_v42 = vpop.permute.xlu1 %2079 }
 0x2aa   :  { %2108 = vst [vmem:[%s3557_s10] sm:$0xff] %v2105_v49  ;;  %v2218_v37 = vpop.permute.xlu0 %2217  ;;  %v2086_v31 = vsel %vm1580_vm9, %v2080_v42, %v3416_v15  ;;  %v2081_v9 = vsel %vm1580_vm9, %v2078_v11, %v2080_v42 }
 0x2ab   :  { %2109 = vst [vmem:[%s3557_s10 + $0x8] sm:$0xff] %v2106_v18  ;;  %v2219_v17 = vsel %vm1580_vm9, %v3454_v32, %v2218_v37  ;;  %v2224_v4 = vsel %vm1580_vm9, %v2218_v37, %v3396_v26  ;;  %v2095_v22 = vrot.slane %v2086_v31, 4 }
 0x2ac   :  { %v2235_v20 = vrot.slane %v2219_v17, 4  ;;  %v2236_v27 = vrot.slane %v2224_v4, 4 }
 0x2ad   :  { %v2098_v15 = vsel %vm1828_vm10, %v2081_v9, %v2095_v22 }
 0x2ae   :  { %v2247_v45 = vadd.f32 %v2235_v20, %v3426_v2  ;;  %v2248_v47 = vadd.f32 %v2236_v27, %v3428_v56  ;;  %v2104_v48 = vadd.f32 %v2098_v15, %v2051_v43 }
 0x2b0   :  { %v2253_v51 = vmul.f32 0.25, %v2247_v45  ;;  %v2254_v52 = vmul.f32 0.25, %v2248_v47  ;;  %v2107_v32 = vmul.f32 0.25, %v2104_v48 }
 0x2b2   :  { %2265 = vst.sshfl [vmem:[#allocation1 + $0x20] sm:$0xff pattern:$0x75316420] %v2253_v51 }
 0x2b3   :  { %2266 = vst.sshfl [vmem:[#allocation1 + $0x28] sm:$0xff pattern:$0x75316420] %v2254_v52 }
 0x2b4   :  { %2110 = vst [vmem:[%s3557_s10 + $0x10] sm:$0xff] %v2107_v32 }
 0x2ba   :  { %v2272_v26 = vld [vmem:[#allocation1 + $0x21] ss:$2 sm:$0xff] }
 0x2bb   :  { %2278 = vst [vmem:[%s3556_s11 + $0x10] sm:$0xff] %v2272_v26 }

</bundles_post_ra>
